<compile_context>
chip_gen: v7x
topology: tpu7x:2x2x1
jax: 0.10.0
libtpu: 0.0.40
codegen_flags: <defaults>
</compile_context>

<pallas_src>
import random

import jax
import jax.numpy as jnp
from jax.experimental import pallas as pl
from jax.experimental.pallas import tpu as pltpu

HIDDEN = 64          # hidden_size
HP = 128             # per-gate padded width (one full 128-lane vreg)
SUBLANE = 8          # sublane granularity for batch padding
NUM_LAYERS = 1       # num_layers (single layer LSTMs)
DEC_IN = 1           # dec_in_size
OUT_SIZE = 1         # output_size
TF_PROB = 0.75       # teaching_forcing_prob


def make_seq2seq_kernel(tf_flags, T_enc, T_dec, B_pad, E):
    """tf_flags: static tuple of bools, one per decoder step."""
    tf_flags = tuple(bool(f) for f in tf_flags)
    H = HIDDEN

    def kernel(enc_x_ref, tgt_ref,
               wih_e_ref, whh_e_ref, b_e_ref,
               wih_d_ref, whh_d_ref, b_d_ref,
               wfc_ref, bfc_ref,
               out_ref):
        enc_x = enc_x_ref[...]            # (T_enc*B_pad, E), time-major
        tgt = tgt_ref[...]                # (T_dec*B_pad, DEC_IN), time-major
        wih_e = wih_e_ref[...]            # (E, 4*HP)
        whh_e = whh_e_ref[...]            # (HP, 4*HP)
        b_e = b_e_ref[...]                # (1, 4*HP)
        wih_d = wih_d_ref[...]            # (DEC_IN=1, 4*HP)
        whh_d = whh_d_ref[...]            # (HP, 4*HP)
        b_d = b_d_ref[...]                # (1, 4*HP)
        wfc = wfc_ref[...]                # (HP, OUT_SIZE)
        bfc = bfc_ref[...]                # (1, OUT_SIZE)

        def gates_to_hc(gates, c):
            # PyTorch gate order i, f, g, o; each gate is exactly one
            # 128-lane block -> vreg-aligned slices (no XLU relayout).
            i = jax.nn.sigmoid(gates[:, 0 * HP:1 * HP])
            f = jax.nn.sigmoid(gates[:, 1 * HP:2 * HP])
            g = jnp.tanh(gates[:, 2 * HP:3 * HP])
            o = jax.nn.sigmoid(gates[:, 3 * HP:4 * HP])
            c_new = f * c + i * g
            h_new = o * jnp.tanh(c_new)
            return h_new, c_new

        # ---------------- Encoder ----------------
        # Batched input projection for ALL encoder steps (one MXU op),
        # with the combined bias folded in.
        gx_all = jnp.dot(enc_x, wih_e, preferred_element_type=jnp.float32) + b_e

        h = jnp.zeros((B_pad, HP), jnp.float32)
        c = jnp.zeros((B_pad, HP), jnp.float32)
        # NOTE: Python unroll is fine at these tiny static lengths; switch to
        # lax.fori_loop(..., unroll=k) (tf schedule in SMEM) for long seqs.
        for t in range(T_enc):
            gates = gx_all[t * B_pad:(t + 1) * B_pad, :] + jnp.dot(
                h, whh_e, preferred_element_type=jnp.float32)
            h, c = gates_to_hc(gates, c)
        h_enc, c_enc = h, c

        # ---------------- Decoder ----------------
        # Faithful to reference: every step restarts from (h_enc, c_enc), so
        # the recurrent projection is loop-invariant -> hoist it.
        gates_h_const = jnp.dot(h_enc, whh_d,
                                preferred_element_type=jnp.float32) + b_d
        wih_d_b = jnp.broadcast_to(wih_d, (B_pad, 4 * HP))  # hoisted broadcast

        # input_init[:, -1, -DEC_IN:] == last encoder step, last feature
        input_t = enc_x[(T_enc - 1) * B_pad:T_enc * B_pad, E - DEC_IN:E]

        outs = []
        for t in range(T_dec):
            # DEC_IN == 1 => x @ W_ih^T is an outer product: (B,1) * (1,4HP).
            gates = input_t * wih_d_b + gates_h_const
            h_d, _ = gates_to_hc(gates, c_enc)
            out_t = jnp.dot(h_d, wfc,
                            preferred_element_type=jnp.float32) + bfc  # (B,1)
            outs.append(out_t)
            if t + 1 < T_dec:
                if tf_flags[t]:
                    input_t = tgt[t * B_pad:(t + 1) * B_pad, :]  # teacher forcing
                else:
                    # future covariate slice [-1:-1] is empty for DEC_IN == 1
                    input_t = out_t

        # Single lane-dense store instead of T_dec width-1 masked stores.
        out_ref[...] = jnp.concatenate(outs, axis=1)           # (B_pad, T_dec)

    return kernel


def pack_params(params):
    """PyTorch-orientation params -> padded, transposed kernel layout."""
    (wih_e, whh_e, b_e, wih_d, whh_d, b_d, wfc, bfc) = params
    H = HIDDEN

    def pad_w(w, in_pad):
        # w: (4H, IN) pytorch orientation -> (in_pad, 4*HP), each gate in its
        # own 128-lane block; pad rows/lanes are zero.
        ins = w.shape[1]
        out = jnp.zeros((in_pad, 4 * HP), jnp.float32)
        for g in range(4):
            out = out.at[:ins, g * HP:g * HP + H].set(w[g * H:(g + 1) * H, :].T)
        return out

    def pad_b(b):
        out = jnp.zeros((1, 4 * HP), jnp.float32)
        for g in range(4):
            out = out.at[:, g * HP:g * HP + H].set(b[:, g * H:(g + 1) * H])
        return out

    wfc_p = jnp.zeros((HP, OUT_SIZE), jnp.float32).at[:H, :].set(wfc.T)
    return (pad_w(wih_e, wih_e.shape[1]), pad_w(whh_e, HP), pad_b(b_e),
            pad_w(wih_d, DEC_IN), pad_w(whh_d, HP), pad_b(b_d),
            wfc_p, bfc)


def seq2seq_forward(enc_x, targets, params, tf_flags):
    B, T_enc, E = enc_x.shape
    T_dec = targets.shape[1]
    B_pad = max(SUBLANE, ((B + SUBLANE - 1) // SUBLANE) * SUBLANE)

    # Pad batch to a full sublane group; pass sequences time-major 2D so
    # per-step slices are aligned (B_pad, .) sublane windows.
    enc_x_p = jnp.zeros((B_pad, T_enc, E), jnp.float32).at[:B].set(enc_x)
    tgt_p = jnp.zeros((B_pad, T_dec, DEC_IN), jnp.float32).at[:B].set(targets)
    enc_x_2d = enc_x_p.transpose(1, 0, 2).reshape(T_enc * B_pad, E)
    tgt_2d = tgt_p.transpose(1, 0, 2).reshape(T_dec * B_pad, DEC_IN)

    kparams = pack_params(params)
    kernel = make_seq2seq_kernel(tf_flags, T_enc, T_dec, B_pad, E)

    vmem = pl.BlockSpec(memory_space=pltpu.MemorySpace.VMEM)
    out2d = pl.pallas_call(
        kernel,
        out_shape=jax.ShapeDtypeStruct((B_pad, T_dec), jnp.float32),
        in_specs=[vmem] * (2 + len(kparams)),
        out_specs=vmem,
        # Everything is tiny here; the explicit limit is headroom for larger
        # B/T (safe on v5e/v6e/v7x). At much larger shapes, tile batch with a
        # ("parallel",) grid axis instead (v7x megacore).
        compiler_params=pltpu.CompilerParams(
            vmem_limit_bytes=32 * 1024 * 1024),
    )(enc_x_2d, tgt_2d, *kparams)

    return out2d[:B, :, None]          # (B, T_dec, OUT_SIZE)


# ---------------- pure-JAX reference (for verification) ----------------
def ref_forward(enc_x, targets, params, tf_flags):
    (wih_e, whh_e, b_e, wih_d, whh_d, b_d, wfc, bfc) = params
    H = HIDDEN

    def cell(x, h, c, wih, whh, b):
        g = x @ wih.T + h @ whh.T + b
        i = jax.nn.sigmoid(g[:, :H])
        f = jax.nn.sigmoid(g[:, H:2 * H])
        gg = jnp.tanh(g[:, 2 * H:3 * H])
        o = jax.nn.sigmoid(g[:, 3 * H:])
        c = f * c + i * gg
        h = o * jnp.tanh(c)
        return h, c

    B = enc_x.shape[0]
    h = jnp.zeros((B, H), jnp.float32)
    c = jnp.zeros((B, H), jnp.float32)
    for t in range(enc_x.shape[1]):
        h, c = cell(enc_x[:, t, :], h, c, wih_e, whh_e, b_e)
    input_t = enc_x[:, -1, -DEC_IN:]
    outs = []
    for t in range(targets.shape[1]):
        hd, _ = cell(input_t, h, c, wih_d, whh_d, b_d)
        o = hd @ wfc.T + bfc
        outs.append(o)
        input_t = targets[:, t, :] if tf_flags[t] else o
    return jnp.stack(outs, axis=1)


def init_params(key, enc_in, H):
    k = 1.0 / (H ** 0.5)
    keys = jax.random.split(key, 8)
    u = lambda kk, shape: jax.random.uniform(kk, shape, jnp.float32, -k, k)
    # PyTorch orientation; pack_params pads/transposes for the kernel.
    wih_e = u(keys[0], (4 * H, enc_in))
    whh_e = u(keys[1], (4 * H, H))
    b_e = u(keys[2], (1, 4 * H))           # b_ih + b_hh combined
    wih_d = u(keys[3], (4 * H, DEC_IN))
    whh_d = u(keys[4], (4 * H, H))
    b_d = u(keys[5], (1, 4 * H))
    wfc = u(keys[6], (OUT_SIZE, H))
    bfc = u(keys[7], (1, OUT_SIZE))
    return (wih_e, whh_e, b_e, wih_d, whh_d, b_d, wfc, bfc)


if __name__ == "__main__":
    B, T_ENC, ENC_IN, T_DEC = 2, 8, 2, 4

    key = jax.random.PRNGKey(0)
    k_x, k_t, k_p = jax.random.split(key, 3)
    enc_x = jax.random.normal(k_x, (B, T_ENC, ENC_IN), jnp.float32)
    # targets feature size equals dec_in_size (=1) for the decoder LSTM input
    targets = jax.random.normal(k_t, (B, T_DEC, DEC_IN), jnp.float32)
    params = init_params(k_p, ENC_IN, HIDDEN)

    # teacher-forcing schedule, drawn once with python random (deterministic)
    rng = random.Random(0)
    tf_flags = [rng.random() < TF_PROB for _ in range(T_DEC)]

    out = seq2seq_forward(enc_x, targets, params, tf_flags)
    out = jax.block_until_ready(out)

    ref = ref_forward(enc_x, targets, params, tf_flags)
    assert out.shape == (B, T_DEC, OUT_SIZE)
    err = jnp.max(jnp.abs(out - ref))
    assert jnp.allclose(out, ref, atol=2e-5, rtol=2e-5), f"mismatch: {err}"

    print("KERNEL_OK")
</pallas_src>

<mosaic_0001>
module attributes {stable_mosaic.version = 11 : i64} {
  func.func @kernel(%arg0: memref<64x2xf32, #tpu.memory_space<vmem>>, %arg1: memref<32x1xf32, #tpu.memory_space<vmem>>, %arg2: memref<2x512xf32, #tpu.memory_space<vmem>>, %arg3: memref<128x512xf32, #tpu.memory_space<vmem>>, %arg4: memref<1x512xf32, #tpu.memory_space<vmem>>, %arg5: memref<1x512xf32, #tpu.memory_space<vmem>>, %arg6: memref<128x512xf32, #tpu.memory_space<vmem>>, %arg7: memref<1x512xf32, #tpu.memory_space<vmem>>, %arg8: memref<128x1xf32, #tpu.memory_space<vmem>>, %arg9: memref<1x1xf32, #tpu.memory_space<vmem>>, %arg10: memref<8x4xf32, #tpu.memory_space<vmem>>) attributes {dimension_semantics = [], scalar_prefetch = 0 : i64, scratch_operands = 0 : i64, tpu.core_type = #tpu.core_type<tc>} {
    %c0 = arith.constant 0 : index
    %c0_0 = arith.constant 0 : index
    %0 = vector.load %arg0[%c0, %c0_0] : memref<64x2xf32, #tpu.memory_space<vmem>>, vector<64x2xf32>
    %c0_1 = arith.constant 0 : index
    %c0_2 = arith.constant 0 : index
    %1 = vector.load %arg1[%c0_1, %c0_2] : memref<32x1xf32, #tpu.memory_space<vmem>>, vector<32x1xf32>
    %c0_3 = arith.constant 0 : index
    %c0_4 = arith.constant 0 : index
    %2 = vector.load %arg2[%c0_3, %c0_4] : memref<2x512xf32, #tpu.memory_space<vmem>>, vector<2x512xf32>
    %c0_5 = arith.constant 0 : index
    %c0_6 = arith.constant 0 : index
    %3 = vector.load %arg3[%c0_5, %c0_6] : memref<128x512xf32, #tpu.memory_space<vmem>>, vector<128x512xf32>
    %c0_7 = arith.constant 0 : index
    %c0_8 = arith.constant 0 : index
    %4 = vector.load %arg4[%c0_7, %c0_8] : memref<1x512xf32, #tpu.memory_space<vmem>>, vector<1x512xf32>
    %c0_9 = arith.constant 0 : index
    %c0_10 = arith.constant 0 : index
    %5 = vector.load %arg5[%c0_9, %c0_10] : memref<1x512xf32, #tpu.memory_space<vmem>>, vector<1x512xf32>
    %c0_11 = arith.constant 0 : index
    %c0_12 = arith.constant 0 : index
    %6 = vector.load %arg6[%c0_11, %c0_12] : memref<128x512xf32, #tpu.memory_space<vmem>>, vector<128x512xf32>
    %c0_13 = arith.constant 0 : index
    %c0_14 = arith.constant 0 : index
    %7 = vector.load %arg7[%c0_13, %c0_14] : memref<1x512xf32, #tpu.memory_space<vmem>>, vector<1x512xf32>
    %c0_15 = arith.constant 0 : index
    %c0_16 = arith.constant 0 : index
    %8 = vector.load %arg8[%c0_15, %c0_16] : memref<128x1xf32, #tpu.memory_space<vmem>>, vector<128x1xf32>
    %c0_17 = arith.constant 0 : index
    %c0_18 = arith.constant 0 : index
    %9 = vector.load %arg9[%c0_17, %c0_18] : memref<1x1xf32, #tpu.memory_space<vmem>>, vector<1x1xf32>
    %cst = arith.constant dense<0.000000e+00> : vector<64x512xf32>
    %10 = tpu.matmul %0, %2, %cst {dimension_numbers = #tpu.dot_dimension_numbers<[1], [0], [0], [1], [0, 0, 1, 1], [], []>} : vector<64x2xf32>, vector<2x512xf32>, vector<64x512xf32> -> vector<64x512xf32>
    %11 = vector.broadcast %4 : vector<1x512xf32> to vector<64x512xf32>
    %12 = arith.addf %10, %11 : vector<64x512xf32>
    %cst_19 = arith.constant 0.000000e+00 : f32
    %13 = vector.broadcast %cst_19 : f32 to vector<8x128xf32>
    %cst_20 = arith.constant 0.000000e+00 : f32
    %14 = vector.broadcast %cst_20 : f32 to vector<8x128xf32>
    %15 = vector.extract_strided_slice %12 {offsets = [0, 0], sizes = [8, 512], strides = [1, 1]} : vector<64x512xf32> to vector<8x512xf32>
    %cst_21 = arith.constant dense<0.000000e+00> : vector<8x512xf32>
    %16 = tpu.matmul %13, %3, %cst_21 {dimension_numbers = #tpu.dot_dimension_numbers<[1], [0], [0], [1], [0, 0, 1, 1], [], []>} : vector<8x128xf32>, vector<128x512xf32>, vector<8x512xf32> -> vector<8x512xf32>
    %17 = arith.addf %15, %16 : vector<8x512xf32>
    %18 = vector.extract_strided_slice %17 {offsets = [0, 0], sizes = [8, 128], strides = [1, 1]} : vector<8x512xf32> to vector<8x128xf32>
    %19 = arith.negf %18 : vector<8x128xf32>
    %20 = math.exp %19 : vector<8x128xf32>
    %cst_22 = arith.constant 1.000000e+00 : f32
    %21 = vector.broadcast %cst_22 : f32 to vector<8x128xf32>
    %22 = arith.addf %21, %20 : vector<8x128xf32>
    %23 = arith.divf %21, %22 : vector<8x128xf32>
    %24 = vector.extract_strided_slice %17 {offsets = [0, 128], sizes = [8, 128], strides = [1, 1]} : vector<8x512xf32> to vector<8x128xf32>
    %25 = arith.negf %24 : vector<8x128xf32>
    %26 = math.exp %25 : vector<8x128xf32>
    %cst_23 = arith.constant 1.000000e+00 : f32
    %27 = vector.broadcast %cst_23 : f32 to vector<8x128xf32>
    %28 = arith.addf %27, %26 : vector<8x128xf32>
    %29 = arith.divf %27, %28 : vector<8x128xf32>
    %30 = vector.extract_strided_slice %17 {offsets = [0, 256], sizes = [8, 128], strides = [1, 1]} : vector<8x512xf32> to vector<8x128xf32>
    %31 = math.tanh %30 : vector<8x128xf32>
    %32 = vector.extract_strided_slice %17 {offsets = [0, 384], sizes = [8, 128], strides = [1, 1]} : vector<8x512xf32> to vector<8x128xf32>
    %33 = arith.negf %32 : vector<8x128xf32>
    %34 = math.exp %33 : vector<8x128xf32>
    %cst_24 = arith.constant 1.000000e+00 : f32
    %35 = vector.broadcast %cst_24 : f32 to vector<8x128xf32>
    %36 = arith.addf %35, %34 : vector<8x128xf32>
    %37 = arith.divf %35, %36 : vector<8x128xf32>
    %38 = arith.mulf %29, %14 : vector<8x128xf32>
    %39 = arith.mulf %23, %31 : vector<8x128xf32>
    %40 = arith.addf %38, %39 : vector<8x128xf32>
    %41 = math.tanh %40 : vector<8x128xf32>
    %42 = arith.mulf %37, %41 : vector<8x128xf32>
    %43 = vector.extract_strided_slice %12 {offsets = [8, 0], sizes = [8, 512], strides = [1, 1]} : vector<64x512xf32> to vector<8x512xf32>
    %cst_25 = arith.constant dense<0.000000e+00> : vector<8x512xf32>
    %44 = tpu.matmul %42, %3, %cst_25 {dimension_numbers = #tpu.dot_dimension_numbers<[1], [0], [0], [1], [0, 0, 1, 1], [], []>} : vector<8x128xf32>, vector<128x512xf32>, vector<8x512xf32> -> vector<8x512xf32>
    %45 = arith.addf %43, %44 : vector<8x512xf32>
    %46 = vector.extract_strided_slice %45 {offsets = [0, 0], sizes = [8, 128], strides = [1, 1]} : vector<8x512xf32> to vector<8x128xf32>
    %47 = arith.negf %46 : vector<8x128xf32>
    %48 = math.exp %47 : vector<8x128xf32>
    %cst_26 = arith.constant 1.000000e+00 : f32
    %49 = vector.broadcast %cst_26 : f32 to vector<8x128xf32>
    %50 = arith.addf %49, %48 : vector<8x128xf32>
    %51 = arith.divf %49, %50 : vector<8x128xf32>
    %52 = vector.extract_strided_slice %45 {offsets = [0, 128], sizes = [8, 128], strides = [1, 1]} : vector<8x512xf32> to vector<8x128xf32>
    %53 = arith.negf %52 : vector<8x128xf32>
    %54 = math.exp %53 : vector<8x128xf32>
    %cst_27 = arith.constant 1.000000e+00 : f32
    %55 = vector.broadcast %cst_27 : f32 to vector<8x128xf32>
    %56 = arith.addf %55, %54 : vector<8x128xf32>
    %57 = arith.divf %55, %56 : vector<8x128xf32>
    %58 = vector.extract_strided_slice %45 {offsets = [0, 256], sizes = [8, 128], strides = [1, 1]} : vector<8x512xf32> to vector<8x128xf32>
    %59 = math.tanh %58 : vector<8x128xf32>
    %60 = vector.extract_strided_slice %45 {offsets = [0, 384], sizes = [8, 128], strides = [1, 1]} : vector<8x512xf32> to vector<8x128xf32>
    %61 = arith.negf %60 : vector<8x128xf32>
    %62 = math.exp %61 : vector<8x128xf32>
    %cst_28 = arith.constant 1.000000e+00 : f32
    %63 = vector.broadcast %cst_28 : f32 to vector<8x128xf32>
    %64 = arith.addf %63, %62 : vector<8x128xf32>
    %65 = arith.divf %63, %64 : vector<8x128xf32>
    %66 = arith.mulf %57, %40 : vector<8x128xf32>
    %67 = arith.mulf %51, %59 : vector<8x128xf32>
    %68 = arith.addf %66, %67 : vector<8x128xf32>
    %69 = math.tanh %68 : vector<8x128xf32>
    %70 = arith.mulf %65, %69 : vector<8x128xf32>
    %71 = vector.extract_strided_slice %12 {offsets = [16, 0], sizes = [8, 512], strides = [1, 1]} : vector<64x512xf32> to vector<8x512xf32>
    %cst_29 = arith.constant dense<0.000000e+00> : vector<8x512xf32>
    %72 = tpu.matmul %70, %3, %cst_29 {dimension_numbers = #tpu.dot_dimension_numbers<[1], [0], [0], [1], [0, 0, 1, 1], [], []>} : vector<8x128xf32>, vector<128x512xf32>, vector<8x512xf32> -> vector<8x512xf32>
    %73 = arith.addf %71, %72 : vector<8x512xf32>
    %74 = vector.extract_strided_slice %73 {offsets = [0, 0], sizes = [8, 128], strides = [1, 1]} : vector<8x512xf32> to vector<8x128xf32>
    %75 = arith.negf %74 : vector<8x128xf32>
    %76 = math.exp %75 : vector<8x128xf32>
    %cst_30 = arith.constant 1.000000e+00 : f32
    %77 = vector.broadcast %cst_30 : f32 to vector<8x128xf32>
    %78 = arith.addf %77, %76 : vector<8x128xf32>
    %79 = arith.divf %77, %78 : vector<8x128xf32>
    %80 = vector.extract_strided_slice %73 {offsets = [0, 128], sizes = [8, 128], strides = [1, 1]} : vector<8x512xf32> to vector<8x128xf32>
    %81 = arith.negf %80 : vector<8x128xf32>
    %82 = math.exp %81 : vector<8x128xf32>
    %cst_31 = arith.constant 1.000000e+00 : f32
    %83 = vector.broadcast %cst_31 : f32 to vector<8x128xf32>
    %84 = arith.addf %83, %82 : vector<8x128xf32>
    %85 = arith.divf %83, %84 : vector<8x128xf32>
    %86 = vector.extract_strided_slice %73 {offsets = [0, 256], sizes = [8, 128], strides = [1, 1]} : vector<8x512xf32> to vector<8x128xf32>
    %87 = math.tanh %86 : vector<8x128xf32>
    %88 = vector.extract_strided_slice %73 {offsets = [0, 384], sizes = [8, 128], strides = [1, 1]} : vector<8x512xf32> to vector<8x128xf32>
    %89 = arith.negf %88 : vector<8x128xf32>
    %90 = math.exp %89 : vector<8x128xf32>
    %cst_32 = arith.constant 1.000000e+00 : f32
    %91 = vector.broadcast %cst_32 : f32 to vector<8x128xf32>
    %92 = arith.addf %91, %90 : vector<8x128xf32>
    %93 = arith.divf %91, %92 : vector<8x128xf32>
    %94 = arith.mulf %85, %68 : vector<8x128xf32>
    %95 = arith.mulf %79, %87 : vector<8x128xf32>
    %96 = arith.addf %94, %95 : vector<8x128xf32>
    %97 = math.tanh %96 : vector<8x128xf32>
    %98 = arith.mulf %93, %97 : vector<8x128xf32>
    %99 = vector.extract_strided_slice %12 {offsets = [24, 0], sizes = [8, 512], strides = [1, 1]} : vector<64x512xf32> to vector<8x512xf32>
    %cst_33 = arith.constant dense<0.000000e+00> : vector<8x512xf32>
    %100 = tpu.matmul %98, %3, %cst_33 {dimension_numbers = #tpu.dot_dimension_numbers<[1], [0], [0], [1], [0, 0, 1, 1], [], []>} : vector<8x128xf32>, vector<128x512xf32>, vector<8x512xf32> -> vector<8x512xf32>
    %101 = arith.addf %99, %100 : vector<8x512xf32>
    %102 = vector.extract_strided_slice %101 {offsets = [0, 0], sizes = [8, 128], strides = [1, 1]} : vector<8x512xf32> to vector<8x128xf32>
    %103 = arith.negf %102 : vector<8x128xf32>
    %104 = math.exp %103 : vector<8x128xf32>
    %cst_34 = arith.constant 1.000000e+00 : f32
    %105 = vector.broadcast %cst_34 : f32 to vector<8x128xf32>
    %106 = arith.addf %105, %104 : vector<8x128xf32>
    %107 = arith.divf %105, %106 : vector<8x128xf32>
    %108 = vector.extract_strided_slice %101 {offsets = [0, 128], sizes = [8, 128], strides = [1, 1]} : vector<8x512xf32> to vector<8x128xf32>
    %109 = arith.negf %108 : vector<8x128xf32>
    %110 = math.exp %109 : vector<8x128xf32>
    %cst_35 = arith.constant 1.000000e+00 : f32
    %111 = vector.broadcast %cst_35 : f32 to vector<8x128xf32>
    %112 = arith.addf %111, %110 : vector<8x128xf32>
    %113 = arith.divf %111, %112 : vector<8x128xf32>
    %114 = vector.extract_strided_slice %101 {offsets = [0, 256], sizes = [8, 128], strides = [1, 1]} : vector<8x512xf32> to vector<8x128xf32>
    %115 = math.tanh %114 : vector<8x128xf32>
    %116 = vector.extract_strided_slice %101 {offsets = [0, 384], sizes = [8, 128], strides = [1, 1]} : vector<8x512xf32> to vector<8x128xf32>
    %117 = arith.negf %116 : vector<8x128xf32>
    %118 = math.exp %117 : vector<8x128xf32>
    %cst_36 = arith.constant 1.000000e+00 : f32
    %119 = vector.broadcast %cst_36 : f32 to vector<8x128xf32>
    %120 = arith.addf %119, %118 : vector<8x128xf32>
    %121 = arith.divf %119, %120 : vector<8x128xf32>
    %122 = arith.mulf %113, %96 : vector<8x128xf32>
    %123 = arith.mulf %107, %115 : vector<8x128xf32>
    %124 = arith.addf %122, %123 : vector<8x128xf32>
    %125 = math.tanh %124 : vector<8x128xf32>
    %126 = arith.mulf %121, %125 : vector<8x128xf32>
    %127 = vector.extract_strided_slice %12 {offsets = [32, 0], sizes = [8, 512], strides = [1, 1]} : vector<64x512xf32> to vector<8x512xf32>
    %cst_37 = arith.constant dense<0.000000e+00> : vector<8x512xf32>
    %128 = tpu.matmul %126, %3, %cst_37 {dimension_numbers = #tpu.dot_dimension_numbers<[1], [0], [0], [1], [0, 0, 1, 1], [], []>} : vector<8x128xf32>, vector<128x512xf32>, vector<8x512xf32> -> vector<8x512xf32>
    %129 = arith.addf %127, %128 : vector<8x512xf32>
    %130 = vector.extract_strided_slice %129 {offsets = [0, 0], sizes = [8, 128], strides = [1, 1]} : vector<8x512xf32> to vector<8x128xf32>
    %131 = arith.negf %130 : vector<8x128xf32>
    %132 = math.exp %131 : vector<8x128xf32>
    %cst_38 = arith.constant 1.000000e+00 : f32
    %133 = vector.broadcast %cst_38 : f32 to vector<8x128xf32>
    %134 = arith.addf %133, %132 : vector<8x128xf32>
    %135 = arith.divf %133, %134 : vector<8x128xf32>
    %136 = vector.extract_strided_slice %129 {offsets = [0, 128], sizes = [8, 128], strides = [1, 1]} : vector<8x512xf32> to vector<8x128xf32>
    %137 = arith.negf %136 : vector<8x128xf32>
    %138 = math.exp %137 : vector<8x128xf32>
    %cst_39 = arith.constant 1.000000e+00 : f32
    %139 = vector.broadcast %cst_39 : f32 to vector<8x128xf32>
    %140 = arith.addf %139, %138 : vector<8x128xf32>
    %141 = arith.divf %139, %140 : vector<8x128xf32>
    %142 = vector.extract_strided_slice %129 {offsets = [0, 256], sizes = [8, 128], strides = [1, 1]} : vector<8x512xf32> to vector<8x128xf32>
    %143 = math.tanh %142 : vector<8x128xf32>
    %144 = vector.extract_strided_slice %129 {offsets = [0, 384], sizes = [8, 128], strides = [1, 1]} : vector<8x512xf32> to vector<8x128xf32>
    %145 = arith.negf %144 : vector<8x128xf32>
    %146 = math.exp %145 : vector<8x128xf32>
    %cst_40 = arith.constant 1.000000e+00 : f32
    %147 = vector.broadcast %cst_40 : f32 to vector<8x128xf32>
    %148 = arith.addf %147, %146 : vector<8x128xf32>
    %149 = arith.divf %147, %148 : vector<8x128xf32>
    %150 = arith.mulf %141, %124 : vector<8x128xf32>
    %151 = arith.mulf %135, %143 : vector<8x128xf32>
    %152 = arith.addf %150, %151 : vector<8x128xf32>
    %153 = math.tanh %152 : vector<8x128xf32>
    %154 = arith.mulf %149, %153 : vector<8x128xf32>
    %155 = vector.extract_strided_slice %12 {offsets = [40, 0], sizes = [8, 512], strides = [1, 1]} : vector<64x512xf32> to vector<8x512xf32>
    %cst_41 = arith.constant dense<0.000000e+00> : vector<8x512xf32>
    %156 = tpu.matmul %154, %3, %cst_41 {dimension_numbers = #tpu.dot_dimension_numbers<[1], [0], [0], [1], [0, 0, 1, 1], [], []>} : vector<8x128xf32>, vector<128x512xf32>, vector<8x512xf32> -> vector<8x512xf32>
    %157 = arith.addf %155, %156 : vector<8x512xf32>
    %158 = vector.extract_strided_slice %157 {offsets = [0, 0], sizes = [8, 128], strides = [1, 1]} : vector<8x512xf32> to vector<8x128xf32>
    %159 = arith.negf %158 : vector<8x128xf32>
    %160 = math.exp %159 : vector<8x128xf32>
    %cst_42 = arith.constant 1.000000e+00 : f32
    %161 = vector.broadcast %cst_42 : f32 to vector<8x128xf32>
    %162 = arith.addf %161, %160 : vector<8x128xf32>
    %163 = arith.divf %161, %162 : vector<8x128xf32>
    %164 = vector.extract_strided_slice %157 {offsets = [0, 128], sizes = [8, 128], strides = [1, 1]} : vector<8x512xf32> to vector<8x128xf32>
    %165 = arith.negf %164 : vector<8x128xf32>
    %166 = math.exp %165 : vector<8x128xf32>
    %cst_43 = arith.constant 1.000000e+00 : f32
    %167 = vector.broadcast %cst_43 : f32 to vector<8x128xf32>
    %168 = arith.addf %167, %166 : vector<8x128xf32>
    %169 = arith.divf %167, %168 : vector<8x128xf32>
    %170 = vector.extract_strided_slice %157 {offsets = [0, 256], sizes = [8, 128], strides = [1, 1]} : vector<8x512xf32> to vector<8x128xf32>
    %171 = math.tanh %170 : vector<8x128xf32>
    %172 = vector.extract_strided_slice %157 {offsets = [0, 384], sizes = [8, 128], strides = [1, 1]} : vector<8x512xf32> to vector<8x128xf32>
    %173 = arith.negf %172 : vector<8x128xf32>
    %174 = math.exp %173 : vector<8x128xf32>
    %cst_44 = arith.constant 1.000000e+00 : f32
    %175 = vector.broadcast %cst_44 : f32 to vector<8x128xf32>
    %176 = arith.addf %175, %174 : vector<8x128xf32>
    %177 = arith.divf %175, %176 : vector<8x128xf32>
    %178 = arith.mulf %169, %152 : vector<8x128xf32>
    %179 = arith.mulf %163, %171 : vector<8x128xf32>
    %180 = arith.addf %178, %179 : vector<8x128xf32>
    %181 = math.tanh %180 : vector<8x128xf32>
    %182 = arith.mulf %177, %181 : vector<8x128xf32>
    %183 = vector.extract_strided_slice %12 {offsets = [48, 0], sizes = [8, 512], strides = [1, 1]} : vector<64x512xf32> to vector<8x512xf32>
    %cst_45 = arith.constant dense<0.000000e+00> : vector<8x512xf32>
    %184 = tpu.matmul %182, %3, %cst_45 {dimension_numbers = #tpu.dot_dimension_numbers<[1], [0], [0], [1], [0, 0, 1, 1], [], []>} : vector<8x128xf32>, vector<128x512xf32>, vector<8x512xf32> -> vector<8x512xf32>
    %185 = arith.addf %183, %184 : vector<8x512xf32>
    %186 = vector.extract_strided_slice %185 {offsets = [0, 0], sizes = [8, 128], strides = [1, 1]} : vector<8x512xf32> to vector<8x128xf32>
    %187 = arith.negf %186 : vector<8x128xf32>
    %188 = math.exp %187 : vector<8x128xf32>
    %cst_46 = arith.constant 1.000000e+00 : f32
    %189 = vector.broadcast %cst_46 : f32 to vector<8x128xf32>
    %190 = arith.addf %189, %188 : vector<8x128xf32>
    %191 = arith.divf %189, %190 : vector<8x128xf32>
    %192 = vector.extract_strided_slice %185 {offsets = [0, 128], sizes = [8, 128], strides = [1, 1]} : vector<8x512xf32> to vector<8x128xf32>
    %193 = arith.negf %192 : vector<8x128xf32>
    %194 = math.exp %193 : vector<8x128xf32>
    %cst_47 = arith.constant 1.000000e+00 : f32
    %195 = vector.broadcast %cst_47 : f32 to vector<8x128xf32>
    %196 = arith.addf %195, %194 : vector<8x128xf32>
    %197 = arith.divf %195, %196 : vector<8x128xf32>
    %198 = vector.extract_strided_slice %185 {offsets = [0, 256], sizes = [8, 128], strides = [1, 1]} : vector<8x512xf32> to vector<8x128xf32>
    %199 = math.tanh %198 : vector<8x128xf32>
    %200 = vector.extract_strided_slice %185 {offsets = [0, 384], sizes = [8, 128], strides = [1, 1]} : vector<8x512xf32> to vector<8x128xf32>
    %201 = arith.negf %200 : vector<8x128xf32>
    %202 = math.exp %201 : vector<8x128xf32>
    %cst_48 = arith.constant 1.000000e+00 : f32
    %203 = vector.broadcast %cst_48 : f32 to vector<8x128xf32>
    %204 = arith.addf %203, %202 : vector<8x128xf32>
    %205 = arith.divf %203, %204 : vector<8x128xf32>
    %206 = arith.mulf %197, %180 : vector<8x128xf32>
    %207 = arith.mulf %191, %199 : vector<8x128xf32>
    %208 = arith.addf %206, %207 : vector<8x128xf32>
    %209 = math.tanh %208 : vector<8x128xf32>
    %210 = arith.mulf %205, %209 : vector<8x128xf32>
    %211 = vector.extract_strided_slice %12 {offsets = [56, 0], sizes = [8, 512], strides = [1, 1]} : vector<64x512xf32> to vector<8x512xf32>
    %cst_49 = arith.constant dense<0.000000e+00> : vector<8x512xf32>
    %212 = tpu.matmul %210, %3, %cst_49 {dimension_numbers = #tpu.dot_dimension_numbers<[1], [0], [0], [1], [0, 0, 1, 1], [], []>} : vector<8x128xf32>, vector<128x512xf32>, vector<8x512xf32> -> vector<8x512xf32>
    %213 = arith.addf %211, %212 : vector<8x512xf32>
    %214 = vector.extract_strided_slice %213 {offsets = [0, 0], sizes = [8, 128], strides = [1, 1]} : vector<8x512xf32> to vector<8x128xf32>
    %215 = arith.negf %214 : vector<8x128xf32>
    %216 = math.exp %215 : vector<8x128xf32>
    %cst_50 = arith.constant 1.000000e+00 : f32
    %217 = vector.broadcast %cst_50 : f32 to vector<8x128xf32>
    %218 = arith.addf %217, %216 : vector<8x128xf32>
    %219 = arith.divf %217, %218 : vector<8x128xf32>
    %220 = vector.extract_strided_slice %213 {offsets = [0, 128], sizes = [8, 128], strides = [1, 1]} : vector<8x512xf32> to vector<8x128xf32>
    %221 = arith.negf %220 : vector<8x128xf32>
    %222 = math.exp %221 : vector<8x128xf32>
    %cst_51 = arith.constant 1.000000e+00 : f32
    %223 = vector.broadcast %cst_51 : f32 to vector<8x128xf32>
    %224 = arith.addf %223, %222 : vector<8x128xf32>
    %225 = arith.divf %223, %224 : vector<8x128xf32>
    %226 = vector.extract_strided_slice %213 {offsets = [0, 256], sizes = [8, 128], strides = [1, 1]} : vector<8x512xf32> to vector<8x128xf32>
    %227 = math.tanh %226 : vector<8x128xf32>
    %228 = vector.extract_strided_slice %213 {offsets = [0, 384], sizes = [8, 128], strides = [1, 1]} : vector<8x512xf32> to vector<8x128xf32>
    %229 = arith.negf %228 : vector<8x128xf32>
    %230 = math.exp %229 : vector<8x128xf32>
    %cst_52 = arith.constant 1.000000e+00 : f32
    %231 = vector.broadcast %cst_52 : f32 to vector<8x128xf32>
    %232 = arith.addf %231, %230 : vector<8x128xf32>
    %233 = arith.divf %231, %232 : vector<8x128xf32>
    %234 = arith.mulf %225, %208 : vector<8x128xf32>
    %235 = arith.mulf %219, %227 : vector<8x128xf32>
    %236 = arith.addf %234, %235 : vector<8x128xf32>
    %237 = math.tanh %236 : vector<8x128xf32>
    %238 = arith.mulf %233, %237 : vector<8x128xf32>
    %cst_53 = arith.constant dense<0.000000e+00> : vector<8x512xf32>
    %239 = tpu.matmul %238, %6, %cst_53 {dimension_numbers = #tpu.dot_dimension_numbers<[1], [0], [0], [1], [0, 0, 1, 1], [], []>} : vector<8x128xf32>, vector<128x512xf32>, vector<8x512xf32> -> vector<8x512xf32>
    %240 = vector.broadcast %7 : vector<1x512xf32> to vector<8x512xf32>
    %241 = arith.addf %239, %240 : vector<8x512xf32>
    %242 = vector.shape_cast %5 : vector<1x512xf32> to vector<1x512xf32>
    %243 = vector.broadcast %242 : vector<1x512xf32> to vector<8x512xf32>
    %244 = vector.extract_strided_slice %0 {offsets = [56, 1], sizes = [8, 1], strides = [1, 1]} : vector<64x2xf32> to vector<8x1xf32>
    %245 = vector.broadcast %244 : vector<8x1xf32> to vector<8x512xf32>
    %246 = arith.mulf %245, %243 : vector<8x512xf32>
    %247 = arith.addf %246, %241 : vector<8x512xf32>
    %248 = vector.extract_strided_slice %247 {offsets = [0, 0], sizes = [8, 128], strides = [1, 1]} : vector<8x512xf32> to vector<8x128xf32>
    %249 = arith.negf %248 : vector<8x128xf32>
    %250 = math.exp %249 : vector<8x128xf32>
    %cst_54 = arith.constant 1.000000e+00 : f32
    %251 = vector.broadcast %cst_54 : f32 to vector<8x128xf32>
    %252 = arith.addf %251, %250 : vector<8x128xf32>
    %253 = arith.divf %251, %252 : vector<8x128xf32>
    %254 = vector.extract_strided_slice %247 {offsets = [0, 128], sizes = [8, 128], strides = [1, 1]} : vector<8x512xf32> to vector<8x128xf32>
    %255 = arith.negf %254 : vector<8x128xf32>
    %256 = math.exp %255 : vector<8x128xf32>
    %cst_55 = arith.constant 1.000000e+00 : f32
    %257 = vector.broadcast %cst_55 : f32 to vector<8x128xf32>
    %258 = arith.addf %257, %256 : vector<8x128xf32>
    %259 = arith.divf %257, %258 : vector<8x128xf32>
    %260 = vector.extract_strided_slice %247 {offsets = [0, 256], sizes = [8, 128], strides = [1, 1]} : vector<8x512xf32> to vector<8x128xf32>
    %261 = math.tanh %260 : vector<8x128xf32>
    %262 = vector.extract_strided_slice %247 {offsets = [0, 384], sizes = [8, 128], strides = [1, 1]} : vector<8x512xf32> to vector<8x128xf32>
    %263 = arith.negf %262 : vector<8x128xf32>
    %264 = math.exp %263 : vector<8x128xf32>
    %cst_56 = arith.constant 1.000000e+00 : f32
    %265 = vector.broadcast %cst_56 : f32 to vector<8x128xf32>
    %266 = arith.addf %265, %264 : vector<8x128xf32>
    %267 = arith.divf %265, %266 : vector<8x128xf32>
    %268 = arith.mulf %259, %236 : vector<8x128xf32>
    %269 = arith.mulf %253, %261 : vector<8x128xf32>
    %270 = arith.addf %268, %269 : vector<8x128xf32>
    %271 = math.tanh %270 : vector<8x128xf32>
    %272 = arith.mulf %267, %271 : vector<8x128xf32>
    %cst_57 = arith.constant dense<0.000000e+00> : vector<8x1xf32>
    %273 = tpu.matmul %272, %8, %cst_57 {dimension_numbers = #tpu.dot_dimension_numbers<[1], [0], [0], [1], [0, 0, 1, 1], [], []>} : vector<8x128xf32>, vector<128x1xf32>, vector<8x1xf32> -> vector<8x1xf32>
    %274 = vector.broadcast %9 : vector<1x1xf32> to vector<8x1xf32>
    %275 = arith.addf %273, %274 : vector<8x1xf32>
    %276 = vector.broadcast %275 : vector<8x1xf32> to vector<8x512xf32>
    %277 = arith.mulf %276, %243 : vector<8x512xf32>
    %278 = arith.addf %277, %241 : vector<8x512xf32>
    %279 = vector.extract_strided_slice %278 {offsets = [0, 0], sizes = [8, 128], strides = [1, 1]} : vector<8x512xf32> to vector<8x128xf32>
    %280 = arith.negf %279 : vector<8x128xf32>
    %281 = math.exp %280 : vector<8x128xf32>
    %cst_58 = arith.constant 1.000000e+00 : f32
    %282 = vector.broadcast %cst_58 : f32 to vector<8x128xf32>
    %283 = arith.addf %282, %281 : vector<8x128xf32>
    %284 = arith.divf %282, %283 : vector<8x128xf32>
    %285 = vector.extract_strided_slice %278 {offsets = [0, 128], sizes = [8, 128], strides = [1, 1]} : vector<8x512xf32> to vector<8x128xf32>
    %286 = arith.negf %285 : vector<8x128xf32>
    %287 = math.exp %286 : vector<8x128xf32>
    %cst_59 = arith.constant 1.000000e+00 : f32
    %288 = vector.broadcast %cst_59 : f32 to vector<8x128xf32>
    %289 = arith.addf %288, %287 : vector<8x128xf32>
    %290 = arith.divf %288, %289 : vector<8x128xf32>
    %291 = vector.extract_strided_slice %278 {offsets = [0, 256], sizes = [8, 128], strides = [1, 1]} : vector<8x512xf32> to vector<8x128xf32>
    %292 = math.tanh %291 : vector<8x128xf32>
    %293 = vector.extract_strided_slice %278 {offsets = [0, 384], sizes = [8, 128], strides = [1, 1]} : vector<8x512xf32> to vector<8x128xf32>
    %294 = arith.negf %293 : vector<8x128xf32>
    %295 = math.exp %294 : vector<8x128xf32>
    %cst_60 = arith.constant 1.000000e+00 : f32
    %296 = vector.broadcast %cst_60 : f32 to vector<8x128xf32>
    %297 = arith.addf %296, %295 : vector<8x128xf32>
    %298 = arith.divf %296, %297 : vector<8x128xf32>
    %299 = arith.mulf %290, %236 : vector<8x128xf32>
    %300 = arith.mulf %284, %292 : vector<8x128xf32>
    %301 = arith.addf %299, %300 : vector<8x128xf32>
    %302 = math.tanh %301 : vector<8x128xf32>
    %303 = arith.mulf %298, %302 : vector<8x128xf32>
    %cst_61 = arith.constant dense<0.000000e+00> : vector<8x1xf32>
    %304 = tpu.matmul %303, %8, %cst_61 {dimension_numbers = #tpu.dot_dimension_numbers<[1], [0], [0], [1], [0, 0, 1, 1], [], []>} : vector<8x128xf32>, vector<128x1xf32>, vector<8x1xf32> -> vector<8x1xf32>
    %305 = vector.broadcast %9 : vector<1x1xf32> to vector<8x1xf32>
    %306 = arith.addf %304, %305 : vector<8x1xf32>
    %307 = vector.broadcast %306 : vector<8x1xf32> to vector<8x512xf32>
    %308 = arith.mulf %307, %243 : vector<8x512xf32>
    %309 = arith.addf %308, %241 : vector<8x512xf32>
    %310 = vector.extract_strided_slice %309 {offsets = [0, 0], sizes = [8, 128], strides = [1, 1]} : vector<8x512xf32> to vector<8x128xf32>
    %311 = arith.negf %310 : vector<8x128xf32>
    %312 = math.exp %311 : vector<8x128xf32>
    %cst_62 = arith.constant 1.000000e+00 : f32
    %313 = vector.broadcast %cst_62 : f32 to vector<8x128xf32>
    %314 = arith.addf %313, %312 : vector<8x128xf32>
    %315 = arith.divf %313, %314 : vector<8x128xf32>
    %316 = vector.extract_strided_slice %309 {offsets = [0, 128], sizes = [8, 128], strides = [1, 1]} : vector<8x512xf32> to vector<8x128xf32>
    %317 = arith.negf %316 : vector<8x128xf32>
    %318 = math.exp %317 : vector<8x128xf32>
    %cst_63 = arith.constant 1.000000e+00 : f32
    %319 = vector.broadcast %cst_63 : f32 to vector<8x128xf32>
    %320 = arith.addf %319, %318 : vector<8x128xf32>
    %321 = arith.divf %319, %320 : vector<8x128xf32>
    %322 = vector.extract_strided_slice %309 {offsets = [0, 256], sizes = [8, 128], strides = [1, 1]} : vector<8x512xf32> to vector<8x128xf32>
    %323 = math.tanh %322 : vector<8x128xf32>
    %324 = vector.extract_strided_slice %309 {offsets = [0, 384], sizes = [8, 128], strides = [1, 1]} : vector<8x512xf32> to vector<8x128xf32>
    %325 = arith.negf %324 : vector<8x128xf32>
    %326 = math.exp %325 : vector<8x128xf32>
    %cst_64 = arith.constant 1.000000e+00 : f32
    %327 = vector.broadcast %cst_64 : f32 to vector<8x128xf32>
    %328 = arith.addf %327, %326 : vector<8x128xf32>
    %329 = arith.divf %327, %328 : vector<8x128xf32>
    %330 = arith.mulf %321, %236 : vector<8x128xf32>
    %331 = arith.mulf %315, %323 : vector<8x128xf32>
    %332 = arith.addf %330, %331 : vector<8x128xf32>
    %333 = math.tanh %332 : vector<8x128xf32>
    %334 = arith.mulf %329, %333 : vector<8x128xf32>
    %cst_65 = arith.constant dense<0.000000e+00> : vector<8x1xf32>
    %335 = tpu.matmul %334, %8, %cst_65 {dimension_numbers = #tpu.dot_dimension_numbers<[1], [0], [0], [1], [0, 0, 1, 1], [], []>} : vector<8x128xf32>, vector<128x1xf32>, vector<8x1xf32> -> vector<8x1xf32>
    %336 = vector.broadcast %9 : vector<1x1xf32> to vector<8x1xf32>
    %337 = arith.addf %335, %336 : vector<8x1xf32>
    %338 = vector.extract_strided_slice %1 {offsets = [16, 0], sizes = [8, 1], strides = [1, 1]} : vector<32x1xf32> to vector<8x1xf32>
    %339 = vector.broadcast %338 : vector<8x1xf32> to vector<8x512xf32>
    %340 = arith.mulf %339, %243 : vector<8x512xf32>
    %341 = arith.addf %340, %241 : vector<8x512xf32>
    %342 = vector.extract_strided_slice %341 {offsets = [0, 0], sizes = [8, 128], strides = [1, 1]} : vector<8x512xf32> to vector<8x128xf32>
    %343 = arith.negf %342 : vector<8x128xf32>
    %344 = math.exp %343 : vector<8x128xf32>
    %cst_66 = arith.constant 1.000000e+00 : f32
    %345 = vector.broadcast %cst_66 : f32 to vector<8x128xf32>
    %346 = arith.addf %345, %344 : vector<8x128xf32>
    %347 = arith.divf %345, %346 : vector<8x128xf32>
    %348 = vector.extract_strided_slice %341 {offsets = [0, 128], sizes = [8, 128], strides = [1, 1]} : vector<8x512xf32> to vector<8x128xf32>
    %349 = arith.negf %348 : vector<8x128xf32>
    %350 = math.exp %349 : vector<8x128xf32>
    %cst_67 = arith.constant 1.000000e+00 : f32
    %351 = vector.broadcast %cst_67 : f32 to vector<8x128xf32>
    %352 = arith.addf %351, %350 : vector<8x128xf32>
    %353 = arith.divf %351, %352 : vector<8x128xf32>
    %354 = vector.extract_strided_slice %341 {offsets = [0, 256], sizes = [8, 128], strides = [1, 1]} : vector<8x512xf32> to vector<8x128xf32>
    %355 = math.tanh %354 : vector<8x128xf32>
    %356 = vector.extract_strided_slice %341 {offsets = [0, 384], sizes = [8, 128], strides = [1, 1]} : vector<8x512xf32> to vector<8x128xf32>
    %357 = arith.negf %356 : vector<8x128xf32>
    %358 = math.exp %357 : vector<8x128xf32>
    %cst_68 = arith.constant 1.000000e+00 : f32
    %359 = vector.broadcast %cst_68 : f32 to vector<8x128xf32>
    %360 = arith.addf %359, %358 : vector<8x128xf32>
    %361 = arith.divf %359, %360 : vector<8x128xf32>
    %362 = arith.mulf %353, %236 : vector<8x128xf32>
    %363 = arith.mulf %347, %355 : vector<8x128xf32>
    %364 = arith.addf %362, %363 : vector<8x128xf32>
    %365 = math.tanh %364 : vector<8x128xf32>
    %366 = arith.mulf %361, %365 : vector<8x128xf32>
    %cst_69 = arith.constant dense<0.000000e+00> : vector<8x1xf32>
    %367 = tpu.matmul %366, %8, %cst_69 {dimension_numbers = #tpu.dot_dimension_numbers<[1], [0], [0], [1], [0, 0, 1, 1], [], []>} : vector<8x128xf32>, vector<128x1xf32>, vector<8x1xf32> -> vector<8x1xf32>
    %368 = vector.broadcast %9 : vector<1x1xf32> to vector<8x1xf32>
    %369 = arith.addf %367, %368 : vector<8x1xf32>
    %370 = tpu.concatenate %275, %306, %337, %369 in 1 : vector<8x1xf32>, vector<8x1xf32>, vector<8x1xf32>, vector<8x1xf32> -> vector<8x4xf32>
    %c0_70 = arith.constant 0 : index
    %c0_71 = arith.constant 0 : index
    %371 = vector.load %arg10[%c0_70, %c0_71] : memref<8x4xf32, #tpu.memory_space<vmem>>, vector<8x4xf32>
    tpu.vector_store %arg10[%c0_70, %c0_71], %370 {strides = array<i32>} : memref<8x4xf32, #tpu.memory_space<vmem>>, vector<8x4xf32>,
    return
  }
}

</mosaic_0001>

<bundles_post_ra>
// kernel: tpu_custom_call.1
= control target key start
LH: loop header
LB: loop body
LE: loop exit
PB: predicated region body
PF: predicated region fallthrough
CT: control target
= control target key end

     0   :  { %s4595_s0 = inlined_call_operand.vmem [shape: f32[64,2], index: 0, kind: input, shape index: {}]   ;;  %s4596_s1 = inlined_call_operand.vmem [shape: f32[32,1], index: 1, kind: input, shape index: {}]   ;;  %s4597_s2 = inlined_call_operand.vmem [shape: f32[2,512], index: 2, kind: input, shape index: {}]   ;;  %s4598_s3 = inlined_call_operand.hbm [shape: f32[128,512], index: 3, kind: input, shape index: {}]   ;;  %s4599_s4 = inlined_call_operand.vmem [shape: f32[1,512], index: 4, kind: input, shape index: {}]   ;;  %s4600_s5 = inlined_call_operand.vmem [shape: f32[1,512], index: 5, kind: input, shape index: {}]   ;;  %s4601_s6 = inlined_call_operand.hbm [shape: f32[128,512], index: 6, kind: input, shape index: {}]   ;;  %s4602_s7 = inlined_call_operand.vmem [shape: f32[1,512], index: 7, kind: input, shape index: {}]   ;;  %s4603_s8 = inlined_call_operand.vmem [shape: f32[128,1], index: 8, kind: input, shape index: {}]   ;;  %s4604_s9 = inlined_call_operand.<no memory space> [shape: f32[1,1], index: 9, kind: input, shape index: {}]   ;;  %s4605_s10 = inlined_call_operand.vmem [shape: f32[8,4], index: 10, kind: output, shape index: {}]  }
   0x1   :  { %v15_v0 = vstv %s4604_s9 }
   0x2   :  { %16 = vst [vmem:[#allocation2] sm:$0x1] %v15_v0 }
   0x3   :  { %17 = vsyncpa [#allocation4], 0 }
   0x4   :  { %18 = vsyncpa [#allocation6], 0  ;;  %s3782_s15 = smov [#allocation3]   ;;  %s3734_s19 = scalar_lea.hbm %s4598_s3, 8192 }
   0x5   :  { %s30_s16 = sshll.u32 %s3782_s15, 4  ;;  %p3735_p0 = scmp.ne.s32.totalorder %s4598_s3, %s3734_s19  ;;  %s31_s16 = int_to_ptr.vmem [resolvable:$true] %s30_s16 }
   0x6   :  { %p3738_p1 = scmp.lt.u32.totalorder %s3734_s19, %s4598_s3 }
   0x8   :  { %p3740_p2 = pnand %p3738_p1, %p3735_p0 }
   0xa   :  { %3743 = shalt.err (!%p3740_p2)
}
   0xb   :  { %s3744_s9 = scalar_lea.vmem %s31_s16, 8192  ;;  %p3749_p4 = scmp.lt.s32.totalorder %s31_s16, %s31_s16 }
   0xc   :  { %p3745_p3 = scmp.ne.s32.totalorder %s31_s16, %s3744_s9  ;;  %p3750_p5 = scmp.lt.s32.totalorder %s3744_s9, %s3744_s9 }
   0xe   :  { %p3751_p6 = por %p3750_p5, %p3749_p4 }
  0x10   :  { %p3752_p7 = pnand %p3751_p6, %p3745_p3 }
  0x12   :  { %3755 = shalt.err (!%p3752_p7)
}
  0x13   :  { %s3783_s24 = smov 512   ;;  %s3784_s25 = smov 32  }
  0x14   :  { %36 = dma.hbm_to_vmem [thread:$0]  %s4598_s3, 8192, %s31_s16, [#allocation4], %s3783_s24, %s3783_s24, %s3784_s25  }
  0x15   :  { %s3785_s28 = smov [#allocation5]   ;;  %s3756_s12 = scalar_lea.hbm %s4601_s6, 8192 }
  0x16   :  { %s46_s29 = sshll.u32 %s3785_s28, 4  ;;  %p3757_p8 = scmp.ne.s32.totalorder %s4601_s6, %s3756_s12  ;;  %s47_s29 = int_to_ptr.vmem [resolvable:$true] %s46_s29 }
  0x17   :  { %p3760_p9 = scmp.lt.u32.totalorder %s3756_s12, %s4601_s6 }
  0x19   :  { %p3762_p10 = pnand %p3760_p9, %p3757_p8 }
  0x1b   :  { %3765 = shalt.err (!%p3762_p10)
}
  0x1c   :  { %s3766_s18 = scalar_lea.vmem %s47_s29, 8192  ;;  %p3771_p12 = scmp.lt.s32.totalorder %s47_s29, %s47_s29 }
  0x1d   :  { %p3767_p11 = scmp.ne.s32.totalorder %s47_s29, %s3766_s18  ;;  %p3772_p13 = scmp.lt.s32.totalorder %s3766_s18, %s3766_s18 }
  0x1f   :  { %p3773_p0 = por %p3772_p13, %p3771_p12 }
  0x21   :  { %p3774_p1 = pnand %p3773_p0, %p3767_p11 }
  0x23   :  { %3777 = shalt.err (!%p3774_p1)
}
  0x24   :  { %52 = dma.hbm_to_vmem [thread:$0]  %s4601_s6, 8192, %s47_s29, [#allocation6], %s3783_s24, %s3783_s24, %s3784_s25  }
  0x25   :  { %3778 = dma.done.wait [#allocation4], 8192  }
  0x26   :  { %3779 = vsyncadd [#allocation4], 4294959104 }
  0x27   :  { %3780 = dma.done.wait [#allocation6], 8192  }
  0x28   :  { %3781 = vsyncadd [#allocation6], 4294959104  ;;  %v224_v1 = vlaneseq  ;;  %v3786_v2 = vmov 1983009808   ;;  %v3787_v4 = vmov 0.0   ;;  %v74_v8 = vld [vmem:[%s4597_s2] sm:$0xff] }
  0x29   :  { %v247_v3 = vunpack.c.l.s4 %v3786_v2  ;;  %360 = vmatprep.mubr.f32.mxu0 %v3787_v4  ;;  %473 = vmatprep.mubr.f32.mxu1 %v3787_v4  ;;  %v245_v10 = vcombine.high %v74_v8, %v74_v8  ;;  %v76_v11 = vld [vmem:[#allocation3 + $0x8] sm:$0xff]  ;;  %vm287_vm0 = vcmask 1041408   ;;  %v75_v13 = vld [vmem:[#allocation3] sm:$0xff]  ;;  %v78_v17 = vld [vmem:[#allocation3 + $0x18] sm:$0xff]  ;;  %vm262_vm1 = vcmask 15360   ;;  %s3792_s22 = smov 1  }
  0x2a   :  { %v3879_v5 = vshrl.u32 %v224_v1, 7  ;;  %v80_v12 = vld [vmem:[#allocation3 + $0x28] sm:$0xff]  ;;  %v79_v14 = vld [vmem:[#allocation3 + $0x20] sm:$0xff]  ;;  %v82_v18 = vld [vmem:[#allocation3 + $0x38] sm:$0xff]  ;;  %vm3790_vm2 = vmmov 0   ;;  %s3794_s23 = smov 3  }
  0x2b   :  { %v248_v6 = vunpack.c.0.s8 %v247_v3  ;;  %v65_v19 = vld [vmem:[%s4595_s0] sm:$0xff]  ;;  %v3888_v20 = vpack.c.bf16 %v80_v12, %v76_v11  ;;  %v77_v21 = vld [vmem:[#allocation3 + $0x10] sm:$0xff]  ;;  %v3891_v24 = vpack.c.bf16 %v79_v14, %v75_v13  ;;  %v84_v25 = vld [vmem:[#allocation3 + $0x48] sm:$0xff]  ;;  %v3894_v27 = vpack.c.bf16 %v82_v18, %v78_v17 }
  0x2c   :  { %v81_v22 = vld [vmem:[#allocation3 + $0x30] sm:$0xff]  ;;  %v88_v26 = vld [vmem:[#allocation3 + $0x68] sm:$0xff]  ;;  %v83_v28 = vld [vmem:[#allocation3 + $0x40] sm:$0xff]  ;;  %vm2510_vm3 = vcmask 7168   ;;  %vm2513_vm4 = vcmask 23552   ;;  %vm2515_vm5 = vcmask 31744  }
  0x2d   :  { %v251_v7 = vsub.s32 %v248_v6, %v3879_v5  ;;  %v87_v29 = vld [vmem:[#allocation3 + $0x60] sm:$0xff]  ;;  %v3898_v30 = vpack.c.bf16 %v81_v22, %v77_v21  ;;  %v86_v31 = vld [vmem:[#allocation3 + $0x58] sm:$0xff]  ;;  %v3905_v34 = vpack.c.bf16 %v88_v26, %v84_v25  ;;  %v85_v35 = vld [vmem:[#allocation3 + $0x50] sm:$0xff] }
  0x2e   :  { %v90_v32 = vld [vmem:[#allocation3 + $0x78] sm:$0xff]  ;;  %v66_v33 = vld [vmem:[%s4595_s0 + $0x8] sm:$0xff]  ;;  %v89_v36 = vld [vmem:[#allocation3 + $0x70] sm:$0xff]  ;;  %v3909_v37 = vpack.c.bf16 %v87_v29, %v83_v28 }
  0x2f   :  { %v252_v9 = vrot.slane %v74_v8, %v251_v7  ;;  %v259_v16 = vrot.slane %v245_v10, %v251_v7  ;;  %v92_v38 = vld [vmem:[#allocation3 + $0x88] sm:$0xff]  ;;  %v3913_v40 = vpack.c.bf16 %v90_v32, %v86_v31  ;;  %v91_v41 = vld [vmem:[#allocation3 + $0x80] sm:$0xff]  ;;  %v3917_v43 = vpack.c.bf16 %v89_v36, %v85_v35  ;;  %v94_v44 = vld [vmem:[#allocation3 + $0x98] sm:$0xff] }
  0x30   :  { %v96_v39 = vld [vmem:[#allocation3 + $0xa8] sm:$0xff]  ;;  %v95_v42 = vld [vmem:[#allocation3 + $0xa0] sm:$0xff]  ;;  %v98_v45 = vld [vmem:[#allocation3 + $0xb8] sm:$0xff] }
  0x31   :  { %v260_v15 = vcombine.high %v252_v9, %v252_v9  ;;  %v261_v23 = vcombine.high %v259_v16, %v259_v16  ;;  %v67_v46 = vld [vmem:[%s4595_s0 + $0x10] sm:$0xff]  ;;  %v3924_v47 = vpack.c.bf16 %v96_v39, %v92_v38  ;;  %v3928_v50 = vpack.c.bf16 %v95_v42, %v91_v41  ;;  %v99_v54 = vld [vmem:[#allocation3 + $0xc0] sm:$0xff]  ;;  %v102_v57 = vld [vmem:[#allocation3 + $0xd8] sm:$0xff] }
  0x32   :  { %v93_v48 = vld [vmem:[#allocation3 + $0x90] sm:$0xff]  ;;  %v100_v51 = vld [vmem:[#allocation3 + $0xc8] sm:$0xff]  ;;  %v3932_v53 = vpack.c.bf16 %v98_v45, %v94_v44  ;;  %v103_v55 = vld [vmem:[#allocation3 + $0xe0] sm:$0xff] }
  0x33   :  { %2523 = vmatprep.subr.msk.mxu0 %vm287_vm0, %v260_v15  ;;  %2533 = vmatprep.subr.msk.mxu1 %vm287_vm0, %v261_v23  ;;  %v97_v49 = vld [vmem:[#allocation3 + $0xb0] sm:$0xff]  ;;  %v104_v52 = vld [vmem:[#allocation3 + $0xe8] sm:$0xff]  ;;  %v106_v58 = vld [vmem:[#allocation3 + $0xf8] sm:$0xff]  ;;  %v3947_v63 = vpack.c.bf16 %v103_v55, %v99_v54 }
  0x34   :  { %2524 = vmatpush1.msk.msra.mxu0 %vm287_vm0, %v252_v9  ;;  %2534 = vmatpush1.msk.msra.mxu1 %vm287_vm0, %v259_v16  ;;  %v3936_v56 = vpack.c.bf16 %v97_v49, %v93_v48  ;;  %v68_v59 = vld [vmem:[%s4595_s0 + $0x18] sm:$0xff]  ;;  %v3943_v60 = vpack.c.bf16 %v104_v52, %v100_v51  ;;  %v108_v0 = vld [vmem:[#allocation3 + $0x108] sm:$0xff]  ;;  %v3951_v2 = vpack.c.bf16 %v106_v58, %v102_v57  ;;  %v107_v3 = vld [vmem:[#allocation3 + $0x100] sm:$0xff] }
  0x35   :  { %2525 = vmatmul.mubr.msk.f32.vlgmr.msra.gmra.mrb[0].mxu0 %vm262_vm1, %v65_v19  ;;  %2789 = vmatprep.subr.bf16.mxu0 %v3888_v20  ;;  %v101_v61 = vld [vmem:[#allocation3 + $0xd0] sm:$0xff]  ;;  %v112_v1 = vld [vmem:[#allocation3 + $0x128] sm:$0xff]  ;;  %v111_v6 = vld [vmem:[#allocation3 + $0x120] sm:$0xff] }
  0x36   :  { %2791 = vmatpush1.bf16.msra.mxu0 %v3891_v24  ;;  %2535 = vmatmul.mubr.msk.f32.vlgmr.msra.gmra.mrb[0].mxu1 %vm262_vm1, %v65_v19  ;;  %v105_v62 = vld [vmem:[#allocation3 + $0xf0] sm:$0xff]  ;;  %v110_v8 = vld [vmem:[#allocation3 + $0x118] sm:$0xff]  ;;  %v3962_v11 = vpack.c.bf16 %v112_v1, %v108_v0  ;;  %v3966_v14 = vpack.c.bf16 %v111_v6, %v107_v3  ;;  %v116_v15 = vld [vmem:[#allocation3 + $0x148] sm:$0xff] }
  0x37   :  { %2821 = vmatprep.subr.bf16.mxu1 %v3894_v27  ;;  %366 = vmatprep.mubr.f32.mxu0 %v3787_v4  ;;  %v3955_v7 = vpack.c.bf16 %v105_v62, %v101_v61  ;;  %v114_v9 = vld [vmem:[#allocation3 + $0x138] sm:$0xff]  ;;  %v109_v12 = vld [vmem:[#allocation3 + $0x110] sm:$0xff]  ;;  %v120_v16 = vld [vmem:[#allocation3 + $0x168] sm:$0xff] }
  0x38   :  { %2823 = vmatpush1.bf16.msra.mxu1 %v3898_v30  ;;  %2793 = vmatprep.subr.bf16.mxu0 %v3905_v34  ;;  %v69_v10 = vld [vmem:[%s4595_s0 + $0x20] sm:$0xff]  ;;  %v113_v13 = vld [vmem:[#allocation3 + $0x130] sm:$0xff]  ;;  %v3970_v17 = vpack.c.bf16 %v114_v9, %v110_v8  ;;  %v70_v25 = vld [vmem:[%s4595_s0 + $0x28] sm:$0xff]  ;;  %v3981_v26 = vpack.c.bf16 %v120_v16, %v116_v15 }
  0x39   :  { %2526 = vmatmul.mubr.msk.f32.gmra.mrb[2].mxu0 %vm262_vm1, %v66_v33  ;;  %479 = vmatprep.mubr.f32.mxu1 %v3787_v4  ;;  %v115_v18 = vld [vmem:[#allocation3 + $0x140] sm:$0xff]  ;;  %v3974_v21 = vpack.c.bf16 %v113_v13, %v109_v12  ;;  %v118_v22 = vld [vmem:[#allocation3 + $0x158] sm:$0xff]  ;;  %v117_v28 = vld [vmem:[#allocation3 + $0x150] sm:$0xff]  ;;  %v4083_v12 = vsub.s32 1, %v3879_v5 }
  0x3a   :  { %2795 = vmatpush1.bf16.msra.mxu0 %v3909_v37  ;;  %2536 = vmatmul.mubr.msk.f32.gmra.mrb[2].mxu1 %vm262_vm1, %v66_v33  ;;  %v119_v19 = vld [vmem:[#allocation3 + $0x160] sm:$0xff]  ;;  %v122_v23 = vld [vmem:[#allocation3 + $0x178] sm:$0xff]  ;;  %v121_v29 = vld [vmem:[#allocation3 + $0x170] sm:$0xff] }
  0x3b   :  { %2825 = vmatprep.subr.bf16.mxu1 %v3913_v40  ;;  %372 = vmatprep.mubr.f32.mxu0 %v3787_v4  ;;  %v3985_v31 = vpack.c.bf16 %v119_v19, %v115_v18  ;;  %v124_v32 = vld [vmem:[#allocation3 + $0x188] sm:$0xff]  ;;  %v3989_v35 = vpack.c.bf16 %v122_v23, %v118_v22  ;;  %v123_v36 = vld [vmem:[#allocation3 + $0x180] sm:$0xff]  ;;  %v3993_v39 = vpack.c.bf16 %v121_v29, %v117_v28  ;;  %v126_v41 = vld [vmem:[#allocation3 + $0x198] sm:$0xff]  ;;  %v4095_v18 = vsub.s32 3, %v3879_v5 }
  0x3c   :  { %2827 = vmatpush1.bf16.msra.mxu1 %v3917_v43  ;;  %2797 = vmatprep.subr.bf16.mxu0 %v3924_v47  ;;  %v128_v33 = vld [vmem:[#allocation3 + $0x1a8] sm:$0xff]  ;;  %v127_v38 = vld [vmem:[#allocation3 + $0x1a0] sm:$0xff]  ;;  %v130_v42 = vld [vmem:[#allocation3 + $0x1b8] sm:$0xff] }
  0x3d   :  { %2527 = vmatmul.mubr.msk.f32.gmra.mrb[4].mxu0 %vm262_vm1, %v67_v46  ;;  %485 = vmatprep.mubr.f32.mxu1 %v3787_v4  ;;  %v71_v44 = vld [vmem:[%s4595_s0 + $0x30] sm:$0xff]  ;;  %v4000_v45 = vpack.c.bf16 %v128_v33, %v124_v32  ;;  %v4004_v49 = vpack.c.bf16 %v127_v38, %v123_v36  ;;  %v4008_v54 = vpack.c.bf16 %v130_v42, %v126_v41  ;;  %v131_v55 = vld [vmem:[#allocation3 + $0x1c0] sm:$0xff]  ;;  %v138_v61 = vld [vmem:[#allocation3 + $0x1f8] sm:$0xff]  ;;  %v4103_v38 = vsub.s32 2, %v3879_v5 }
  0x3e   :  { %2799 = vmatpush1.bf16.msra.mxu0 %v3928_v50  ;;  %2537 = vmatmul.mubr.msk.f32.gmra.mrb[4].mxu1 %vm262_vm1, %v67_v46  ;;  %v125_v46 = vld [vmem:[#allocation3 + $0x190] sm:$0xff]  ;;  %v132_v51 = vld [vmem:[#allocation3 + $0x1c8] sm:$0xff]  ;;  %v135_v57 = vld [vmem:[#allocation3 + $0x1e0] sm:$0xff] }
  0x3f   :  { %2829 = vmatprep.subr.bf16.mxu1 %v3932_v53  ;;  %378 = vmatprep.mubr.f32.mxu0 %v3787_v4  ;;  %v129_v48 = vld [vmem:[#allocation3 + $0x1b0] sm:$0xff]  ;;  %v136_v52 = vld [vmem:[#allocation3 + $0x1e8] sm:$0xff]  ;;  %v4023_v6 = vpack.c.bf16 %v135_v57, %v131_v55  ;;  %v139_v13 = vld [vmem:[%s4599_s4] sm:$0xf] }
  0x40   :  { %2831 = vmatpush1.bf16.msra.mxu1 %v3936_v56  ;;  %2801 = vmatprep.subr.bf16.mxu0 %v3943_v60  ;;  %v4012_v58 = vpack.c.bf16 %v129_v48, %v125_v46  ;;  %v72_v62 = vld [vmem:[%s4595_s0 + $0x38] sm:$0xff]  ;;  %v4019_v0 = vpack.c.bf16 %v136_v52, %v132_v51  ;;  %v4092_v16 = vrot.slane %v139_v13, %v4083_v12 }
  0x41   :  { %2528 = vmatmul.mubr.msk.f32.gmra.mrb[6].mxu0 %vm262_vm1, %v68_v59  ;;  %491 = vmatprep.mubr.f32.mxu1 %v3787_v4  ;;  %v133_v1 = vld [vmem:[#allocation3 + $0x1d0] sm:$0xff]  ;;  %v4100_v36 = vrot.slane %v139_v13, %v4095_v18  ;;  %v4107_v42 = vrot.slane %v139_v13, %v4103_v38 }
  0x42   :  { %2803 = vmatpush1.bf16.msra.mxu0 %v3947_v63  ;;  %2538 = vmatmul.mubr.msk.f32.gmra.mrb[6].mxu1 %vm262_vm1, %v68_v59  ;;  %v134_v59 = vld [vmem:[#allocation3 + $0x1d8] sm:$0xff]  ;;  %v137_v3 = vld [vmem:[#allocation3 + $0x1f0] sm:$0xff] }
  0x43   :  { %2833 = vmatprep.subr.bf16.mxu1 %v3951_v2  ;;  %384 = vmatprep.mubr.f32.mxu0 %v3787_v4  ;;  %v4027_v8 = vpack.c.bf16 %v138_v61, %v134_v59  ;;  %v4031_v9 = vpack.c.bf16 %v137_v3, %v133_v1 }
  0x44   :  { %2835 = vmatpush1.bf16.msra.mxu1 %v3955_v7  ;;  %2805 = vmatprep.subr.bf16.mxu0 %v3962_v11 }
  0x45   :  { %2529 = vmatmul.mubr.msk.f32.gmra.mrb[8].mxu0 %vm262_vm1, %v69_v10  ;;  %497 = vmatprep.mubr.f32.mxu1 %v3787_v4 }
  0x46   :  { %2807 = vmatpush1.bf16.msra.mxu0 %v3966_v14  ;;  %2539 = vmatmul.mubr.msk.f32.gmra.mrb[8].mxu1 %vm262_vm1, %v69_v10  ;;  %v4080_v10 = vsub.s32 0, %v3879_v5 }
  0x47   :  { %2837 = vmatprep.subr.bf16.mxu1 %v3970_v17  ;;  %390 = vmatprep.mubr.f32.mxu0 %v3787_v4 }
  0x48   :  { %2839 = vmatpush1.bf16.msra.mxu1 %v3974_v21  ;;  %2809 = vmatprep.subr.bf16.mxu0 %v3981_v26  ;;  %v4089_v15 = vrot.slane %v139_v13, %v4080_v10 }
  0x49   :  { %2530 = vmatmul.mubr.msk.f32.gmra.mrb[10].mxu0 %vm262_vm1, %v70_v25  ;;  %503 = vmatprep.mubr.f32.mxu1 %v3787_v4 }
  0x4a   :  { %2811 = vmatpush1.bf16.msra.mxu0 %v3985_v31  ;;  %2540 = vmatmul.mubr.msk.f32.gmra.mrb[10].mxu1 %vm262_vm1, %v70_v25 }
  0x4b   :  { %2841 = vmatprep.subr.bf16.mxu1 %v3989_v35  ;;  %396 = vmatprep.mubr.f32.mxu0 %v3787_v4 }
  0x4c   :  { %2843 = vmatpush1.bf16.msra.mxu1 %v3993_v39  ;;  %2813 = vmatprep.subr.bf16.mxu0 %v4000_v45 }
  0x4d   :  { %2531 = vmatmul.mubr.msk.f32.gmra.mrb[12].mxu0 %vm262_vm1, %v71_v44  ;;  %509 = vmatprep.mubr.f32.mxu1 %v3787_v4 }
  0x4e   :  { %2815 = vmatpush1.bf16.msra.mxu0 %v4004_v49  ;;  %2541 = vmatmul.mubr.msk.f32.gmra.mrb[12].mxu1 %vm262_vm1, %v71_v44 }
  0x4f   :  { %2845 = vmatprep.subr.bf16.mxu1 %v4008_v54  ;;  %402 = vmatprep.mubr.f32.mxu0 %v3787_v4 }
  0x50   :  { %2847 = vmatpush1.bf16.msra.mxu1 %v4012_v58  ;;  %2817 = vmatprep.subr.bf16.mxu0 %v4019_v0 }
  0x51   :  { %2532 = vmatmul.mubr.msk.f32.gmra.mrb[14].mxu0 %vm262_vm1, %v72_v62  ;;  %515 = vmatprep.mubr.f32.mxu1 %v3787_v4 }
  0x52   :  { %2819 = vmatpush1.bf16.msra.mxu0 %v4023_v6  ;;  %2542 = vmatmul.mubr.msk.f32.gmra.mrb[14].mxu1 %vm262_vm1, %v72_v62 }
  0x53   :  { %2849 = vmatprep.subr.bf16.mxu1 %v4027_v8  ;;  %586 = vmatprep.mubr.f32.mxu0 %v3787_v4 }
  0x54   :  { %2851 = vmatpush1.bf16.msra.mxu1 %v4031_v9  ;;  %657 = vmatprep.mubr.f32.mxu1 %v3787_v4 }
  0x55   :  { %587 = vmatmul.mubr.f32.vlgmr.msra.gmra.mrb[0].mxu0 %v3787_v4  ;;  %2853 = vmatprep.subr.bf16.mxu0 %v3888_v20 }
  0x56   :  { %2885 = vmatprep.subr.bf16.mxu1 %v3894_v27  ;;  %2855 = vmatpush1.bf16.msra.mxu0 %v3891_v24 }
  0x57   :  { %658 = vmatmul.mubr.f32.vlgmr.msra.gmra.mrb[0].mxu1 %v3787_v4  ;;  %2857 = vmatprep.subr.bf16.mxu0 %v3905_v34 }
  0x58   :  { %2887 = vmatpush1.bf16.msra.mxu1 %v3898_v30  ;;  %756 = vmatprep.mubr.f32.mxu0 %v3787_v4 }
  0x59   :  { %2889 = vmatprep.subr.bf16.mxu1 %v3913_v40  ;;  %827 = vmatprep.mubr.f32.mxu1 %v3787_v4 }
  0x5a   :  { %2859 = vmatpush1.bf16.msra.mxu0 %v3909_v37 }
  0x5b   :  { %2861 = vmatprep.subr.bf16.mxu0 %v3924_v47 }
  0x5c   :  { %2891 = vmatpush1.bf16.msra.mxu1 %v3917_v43 }
  0x5d   :  { %2893 = vmatprep.subr.bf16.mxu1 %v3932_v53 }
  0x5e   :  { %2863 = vmatpush1.bf16.msra.mxu0 %v3928_v50 }
  0x5f   :  { %2865 = vmatprep.subr.bf16.mxu0 %v3943_v60 }
  0x60   :  { %2895 = vmatpush1.bf16.msra.mxu1 %v3936_v56 }
  0x61   :  { %2897 = vmatprep.subr.bf16.mxu1 %v3951_v2 }
  0x62   :  { %2867 = vmatpush1.bf16.msra.mxu0 %v3947_v63 }
  0x63   :  { %2869 = vmatprep.subr.bf16.mxu0 %v3962_v11 }
  0x64   :  { %2899 = vmatpush1.bf16.msra.mxu1 %v3955_v7 }
  0x65   :  { %2901 = vmatprep.subr.bf16.mxu1 %v3970_v17 }
  0x66   :  { %2871 = vmatpush1.bf16.msra.mxu0 %v3966_v14 }
  0x67   :  { %2873 = vmatprep.subr.bf16.mxu0 %v3981_v26 }
  0x68   :  { %2903 = vmatpush1.bf16.msra.mxu1 %v3974_v21 }
  0x69   :  { %2905 = vmatprep.subr.bf16.mxu1 %v3989_v35 }
  0x6a   :  { %2875 = vmatpush1.bf16.msra.mxu0 %v3985_v31 }
  0x6b   :  { %2877 = vmatprep.subr.bf16.mxu0 %v4000_v45 }
  0x6c   :  { %2907 = vmatpush1.bf16.msra.mxu1 %v3993_v39 }
  0x6d   :  { %2909 = vmatprep.subr.bf16.mxu1 %v4008_v54 }
  0x6e   :  { %2879 = vmatpush1.bf16.msra.mxu0 %v4004_v49 }
  0x6f   :  { %2881 = vmatprep.subr.bf16.mxu0 %v4019_v0 }
  0x70   :  { %2911 = vmatpush1.bf16.msra.mxu1 %v4012_v58 }
  0x71   :  { %2913 = vmatprep.subr.bf16.mxu1 %v4027_v8 }
  0x72   :  { %2883 = vmatpush1.bf16.msra.mxu0 %v4023_v6 }
  0x73   :  { %2917 = vmatprep.subr.bf16.mxu0 %v3888_v20 }
  0x74   :  { %2915 = vmatpush1.bf16.msra.mxu1 %v4031_v9 }
  0x75   :  { %2949 = vmatprep.subr.bf16.mxu1 %v3894_v27 }
 0x128   :  { %v588_v19 = vpop.f32.mrb[0].mxu0 }
 0x129   :  { %v3460_v22 = vadd.f32 %v588_v19, %v4089_v15  ;;  %v590_v23 = vpop.f32.mrb[1].mxu0 }
 0x12a   :  { %v3461_v25 = vadd.f32 %v590_v23, %v4092_v16  ;;  %v659_v28 = vpop.f32.mrb[0].mxu1 }
 0x12b   :  { %v2543_v29 = vmul.f32 -1.442695, %v3460_v22  ;;  %v661_v32 = vpop.f32.mrb[1].mxu1  ;;  %v3476_v46 = vadd.f32 %v659_v28, %v4107_v42 }
 0x12c   :  { %v2544_v33 = vmul.f32 -1.442695, %v3461_v25  ;;  %v3477_v41 = vadd.f32 %v661_v32, %v4100_v36 }
 0x12d   :  { %3541 = vpow2.f32 %v2543_v29 }
 0x12e   :  { %3543 = vpow2.f32 %v2544_v33  ;;  %v2545_v44 = vmul.f32 -1.442695, %v3477_v41 }
 0x130   :  { %3545 = vpow2.f32 %v2545_v44 }
 0x131   :  { %3547 = vtanh.f32 %v3476_v46 }
 0x137   :  { %v3542_v48 = vpop.eup %3541 }
 0x138   :  { %v3544_v51 = vpop.eup %3543  ;;  %v671_v52 = vadd.f32 1.0, %v3542_v48 }
 0x139   :  { %v677_v55 = vadd.f32 1.0, %v3544_v51 }
 0x13a   :  { %3549 = vrcp.f32 %v671_v52  ;;  %v3546_v5 = vpop.eup %3545 }
 0x13b   :  { %3551 = vrcp.f32 %v677_v55  ;;  %v3548_v57 = vpop.eup %3547  ;;  %v684_v1 = vadd.f32 1.0, %v3546_v5 }
 0x13d   :  { %3553 = vrcp.f32 %v684_v1 }
 0x144   :  { %v3550_v59 = vpop.eup %3549 }
 0x145   :  { %v3552_v61 = vpop.eup %3551  ;;  %v688_v62 = vmul.f32 %v3550_v59, %v3548_v57 }
 0x146   :  { %v687_v3 = vmul.f32 0.0, %v3552_v61 }
 0x147   :  { %v3554_v19 = vpop.eup %3553 }
 0x148   :  { %v4110_v13 = vadd.f32 %v688_v62, %v687_v3 }
 0x14a   :  { %3555 = vtanh.f32 %v4110_v13 }
 0x154   :  { %v3556_v22 = vpop.eup %3555 }
 0x155   :  { %v691_v23 = vmul.f32 %v3556_v22, %v3554_v19 }
 0x157   :  { %757 = vmatmul.mubr.f32.vlgmr.msra.gmra.mrb[2].mxu0 %v691_v23  ;;  %828 = vmatmul.mubr.f32.vlgmr.msra.gmra.mrb[2].mxu1 %v691_v23 }
 0x158   :  { %2919 = vmatpush1.bf16.msra.mxu0 %v3891_v24  ;;  %2951 = vmatpush1.bf16.msra.mxu1 %v3898_v30 }
 0x159   :  { %2921 = vmatprep.subr.bf16.mxu0 %v3905_v34  ;;  %2953 = vmatprep.subr.bf16.mxu1 %v3913_v40 }
 0x15a   :  { %926 = vmatprep.mubr.f32.mxu0 %v3787_v4  ;;  %997 = vmatprep.mubr.f32.mxu1 %v3787_v4 }
 0x15c   :  { %2923 = vmatpush1.bf16.msra.mxu0 %v3909_v37  ;;  %2955 = vmatpush1.bf16.msra.mxu1 %v3917_v43 }
 0x15d   :  { %2925 = vmatprep.subr.bf16.mxu0 %v3924_v47  ;;  %2957 = vmatprep.subr.bf16.mxu1 %v3932_v53 }
 0x160   :  { %2927 = vmatpush1.bf16.msra.mxu0 %v3928_v50  ;;  %2959 = vmatpush1.bf16.msra.mxu1 %v3936_v56 }
 0x161   :  { %2929 = vmatprep.subr.bf16.mxu0 %v3943_v60  ;;  %2961 = vmatprep.subr.bf16.mxu1 %v3951_v2 }
 0x164   :  { %2931 = vmatpush1.bf16.msra.mxu0 %v3947_v63  ;;  %2963 = vmatpush1.bf16.msra.mxu1 %v3955_v7 }
 0x165   :  { %2933 = vmatprep.subr.bf16.mxu0 %v3962_v11  ;;  %2965 = vmatprep.subr.bf16.mxu1 %v3970_v17 }
 0x168   :  { %2935 = vmatpush1.bf16.msra.mxu0 %v3966_v14  ;;  %2967 = vmatpush1.bf16.msra.mxu1 %v3974_v21 }
 0x169   :  { %2937 = vmatprep.subr.bf16.mxu0 %v3981_v26  ;;  %2969 = vmatprep.subr.bf16.mxu1 %v3989_v35 }
 0x16c   :  { %2939 = vmatpush1.bf16.msra.mxu0 %v3985_v31  ;;  %2971 = vmatpush1.bf16.msra.mxu1 %v3993_v39 }
 0x16d   :  { %2941 = vmatprep.subr.bf16.mxu0 %v4000_v45  ;;  %2973 = vmatprep.subr.bf16.mxu1 %v4008_v54 }
 0x170   :  { %2943 = vmatpush1.bf16.msra.mxu0 %v4004_v49  ;;  %2975 = vmatpush1.bf16.msra.mxu1 %v4012_v58 }
 0x171   :  { %2945 = vmatprep.subr.bf16.mxu0 %v4019_v0  ;;  %2977 = vmatprep.subr.bf16.mxu1 %v4027_v8 }
 0x174   :  { %2947 = vmatpush1.bf16.msra.mxu0 %v4023_v6  ;;  %2979 = vmatpush1.bf16.msra.mxu1 %v4031_v9 }
 0x175   :  { %2981 = vmatprep.subr.bf16.mxu0 %v3888_v20  ;;  %3013 = vmatprep.subr.bf16.mxu1 %v3894_v27 }
 0x22a   :  { %v758_v25 = vpop.f32.mrb[2].mxu0  ;;  %v829_v28 = vpop.f32.mrb[2].mxu1 }
 0x22b   :  { %v3462_v29 = vadd.f32 %v758_v25, %v4089_v15  ;;  %v760_v32 = vpop.f32.mrb[3].mxu0  ;;  %v831_v33 = vpop.f32.mrb[3].mxu1  ;;  %v3478_v52 = vadd.f32 %v829_v28, %v4107_v42 }
 0x22c   :  { %v3463_v41 = vadd.f32 %v760_v32, %v4092_v16  ;;  %v3479_v48 = vadd.f32 %v831_v33, %v4100_v36 }
 0x22d   :  { %v2546_v44 = vmul.f32 -1.442695, %v3462_v29 }
 0x22e   :  { %v2547_v46 = vmul.f32 -1.442695, %v3463_v41  ;;  %v2548_v51 = vmul.f32 -1.442695, %v3479_v48 }
 0x22f   :  { %3557 = vpow2.f32 %v2546_v44 }
 0x230   :  { %3559 = vpow2.f32 %v2547_v46 }
 0x231   :  { %3561 = vpow2.f32 %v2548_v51 }
 0x232   :  { %3563 = vtanh.f32 %v3478_v52 }
 0x239   :  { %v3558_v55 = vpop.eup %3557 }
 0x23a   :  { %v3560_v5 = vpop.eup %3559  ;;  %v841_v57 = vadd.f32 1.0, %v3558_v55 }
 0x23b   :  { %v847_v59 = vadd.f32 1.0, %v3560_v5  ;;  %v3562_v61 = vpop.eup %3561 }
 0x23c   :  { %3565 = vrcp.f32 %v841_v57  ;;  %v3564_v62 = vpop.eup %3563  ;;  %v854_v22 = vadd.f32 1.0, %v3562_v61 }
 0x23d   :  { %3567 = vrcp.f32 %v847_v59 }
 0x23e   :  { %3569 = vrcp.f32 %v854_v22 }
 0x246   :  { %v3566_v1 = vpop.eup %3565 }
 0x247   :  { %v3568_v3 = vpop.eup %3567  ;;  %v858_v19 = vmul.f32 %v3566_v1, %v3564_v62 }
 0x248   :  { %v857_v23 = vmul.f32 %v3568_v3, %v4110_v13  ;;  %v3570_v28 = vpop.eup %3569 }
 0x24a   :  { %v4152_v25 = vadd.f32 %v858_v19, %v857_v23 }
 0x24c   :  { %3571 = vtanh.f32 %v4152_v25 }
 0x256   :  { %v3572_v29 = vpop.eup %3571 }
 0x257   :  { %v861_v32 = vmul.f32 %v3572_v29, %v3570_v28 }
 0x259   :  { %927 = vmatmul.mubr.f32.vlgmr.msra.gmra.mrb[4].mxu0 %v861_v32  ;;  %998 = vmatmul.mubr.f32.vlgmr.msra.gmra.mrb[4].mxu1 %v861_v32 }
 0x25a   :  { %2983 = vmatpush1.bf16.msra.mxu0 %v3891_v24  ;;  %3015 = vmatpush1.bf16.msra.mxu1 %v3898_v30 }
 0x25b   :  { %2985 = vmatprep.subr.bf16.mxu0 %v3905_v34  ;;  %3017 = vmatprep.subr.bf16.mxu1 %v3913_v40 }
 0x25c   :  { %1096 = vmatprep.mubr.f32.mxu0 %v3787_v4  ;;  %1167 = vmatprep.mubr.f32.mxu1 %v3787_v4 }
 0x25e   :  { %2987 = vmatpush1.bf16.msra.mxu0 %v3909_v37  ;;  %3019 = vmatpush1.bf16.msra.mxu1 %v3917_v43 }
 0x25f   :  { %2989 = vmatprep.subr.bf16.mxu0 %v3924_v47  ;;  %3021 = vmatprep.subr.bf16.mxu1 %v3932_v53 }
 0x262   :  { %2991 = vmatpush1.bf16.msra.mxu0 %v3928_v50  ;;  %3023 = vmatpush1.bf16.msra.mxu1 %v3936_v56 }
 0x263   :  { %2993 = vmatprep.subr.bf16.mxu0 %v3943_v60  ;;  %3025 = vmatprep.subr.bf16.mxu1 %v3951_v2 }
 0x266   :  { %2995 = vmatpush1.bf16.msra.mxu0 %v3947_v63  ;;  %3027 = vmatpush1.bf16.msra.mxu1 %v3955_v7 }
 0x267   :  { %2997 = vmatprep.subr.bf16.mxu0 %v3962_v11  ;;  %3029 = vmatprep.subr.bf16.mxu1 %v3970_v17 }
 0x26a   :  { %2999 = vmatpush1.bf16.msra.mxu0 %v3966_v14  ;;  %3031 = vmatpush1.bf16.msra.mxu1 %v3974_v21 }
 0x26b   :  { %3001 = vmatprep.subr.bf16.mxu0 %v3981_v26  ;;  %3033 = vmatprep.subr.bf16.mxu1 %v3989_v35 }
 0x26e   :  { %3003 = vmatpush1.bf16.msra.mxu0 %v3985_v31  ;;  %3035 = vmatpush1.bf16.msra.mxu1 %v3993_v39 }
 0x26f   :  { %3005 = vmatprep.subr.bf16.mxu0 %v4000_v45  ;;  %3037 = vmatprep.subr.bf16.mxu1 %v4008_v54 }
 0x272   :  { %3007 = vmatpush1.bf16.msra.mxu0 %v4004_v49  ;;  %3039 = vmatpush1.bf16.msra.mxu1 %v4012_v58 }
 0x273   :  { %3009 = vmatprep.subr.bf16.mxu0 %v4019_v0  ;;  %3041 = vmatprep.subr.bf16.mxu1 %v4027_v8 }
 0x276   :  { %3011 = vmatpush1.bf16.msra.mxu0 %v4023_v6  ;;  %3043 = vmatpush1.bf16.msra.mxu1 %v4031_v9 }
 0x277   :  { %3045 = vmatprep.subr.bf16.mxu0 %v3888_v20  ;;  %3077 = vmatprep.subr.bf16.mxu1 %v3894_v27 }
 0x32c   :  { %v928_v13 = vpop.f32.mrb[4].mxu0  ;;  %v999_v33 = vpop.f32.mrb[4].mxu1 }
 0x32d   :  { %v3464_v41 = vadd.f32 %v928_v13, %v4089_v15  ;;  %v930_v44 = vpop.f32.mrb[5].mxu0  ;;  %v1001_v46 = vpop.f32.mrb[5].mxu1  ;;  %v3480_v57 = vadd.f32 %v999_v33, %v4107_v42 }
 0x32e   :  { %v3465_v48 = vadd.f32 %v930_v44, %v4092_v16  ;;  %v3481_v55 = vadd.f32 %v1001_v46, %v4100_v36 }
 0x32f   :  { %v2549_v51 = vmul.f32 -1.442695, %v3464_v41 }
 0x330   :  { %v2550_v52 = vmul.f32 -1.442695, %v3465_v48  ;;  %v2551_v5 = vmul.f32 -1.442695, %v3481_v55 }
 0x331   :  { %3573 = vpow2.f32 %v2549_v51 }
 0x332   :  { %3575 = vpow2.f32 %v2550_v52 }
 0x333   :  { %3577 = vpow2.f32 %v2551_v5 }
 0x334   :  { %3579 = vtanh.f32 %v3480_v57 }
 0x33b   :  { %v3574_v59 = vpop.eup %3573 }
 0x33c   :  { %v3576_v61 = vpop.eup %3575  ;;  %v1011_v62 = vadd.f32 1.0, %v3574_v59 }
 0x33d   :  { %v1017_v1 = vadd.f32 1.0, %v3576_v61  ;;  %v3578_v3 = vpop.eup %3577 }
 0x33e   :  { %3581 = vrcp.f32 %v1011_v62  ;;  %v3580_v19 = vpop.eup %3579  ;;  %v1024_v29 = vadd.f32 1.0, %v3578_v3 }
 0x33f   :  { %3583 = vrcp.f32 %v1017_v1 }
 0x340   :  { %3585 = vrcp.f32 %v1024_v29 }
 0x348   :  { %v3582_v22 = vpop.eup %3581 }
 0x349   :  { %v3584_v23 = vpop.eup %3583  ;;  %v1028_v28 = vmul.f32 %v3582_v22, %v3580_v19 }
 0x34a   :  { %v1027_v32 = vmul.f32 %v3584_v23, %v4152_v25  ;;  %v3586_v33 = vpop.eup %3585 }
 0x34c   :  { %v4194_v13 = vadd.f32 %v1028_v28, %v1027_v32 }
 0x34e   :  { %3587 = vtanh.f32 %v4194_v13 }
 0x358   :  { %v3588_v41 = vpop.eup %3587 }
 0x359   :  { %v1031_v44 = vmul.f32 %v3588_v41, %v3586_v33 }
 0x35b   :  { %1097 = vmatmul.mubr.f32.vlgmr.msra.gmra.mrb[6].mxu0 %v1031_v44  ;;  %1168 = vmatmul.mubr.f32.vlgmr.msra.gmra.mrb[6].mxu1 %v1031_v44 }
 0x35c   :  { %3047 = vmatpush1.bf16.msra.mxu0 %v3891_v24  ;;  %3079 = vmatpush1.bf16.msra.mxu1 %v3898_v30 }
 0x35d   :  { %3049 = vmatprep.subr.bf16.mxu0 %v3905_v34  ;;  %3081 = vmatprep.subr.bf16.mxu1 %v3913_v40 }
 0x35e   :  { %1266 = vmatprep.mubr.f32.mxu0 %v3787_v4  ;;  %1337 = vmatprep.mubr.f32.mxu1 %v3787_v4 }
 0x360   :  { %3051 = vmatpush1.bf16.msra.mxu0 %v3909_v37  ;;  %3083 = vmatpush1.bf16.msra.mxu1 %v3917_v43 }
 0x361   :  { %3053 = vmatprep.subr.bf16.mxu0 %v3924_v47  ;;  %3085 = vmatprep.subr.bf16.mxu1 %v3932_v53 }
 0x364   :  { %3055 = vmatpush1.bf16.msra.mxu0 %v3928_v50  ;;  %3087 = vmatpush1.bf16.msra.mxu1 %v3936_v56 }
 0x365   :  { %3057 = vmatprep.subr.bf16.mxu0 %v3943_v60  ;;  %3089 = vmatprep.subr.bf16.mxu1 %v3951_v2 }
 0x368   :  { %3059 = vmatpush1.bf16.msra.mxu0 %v3947_v63  ;;  %3091 = vmatpush1.bf16.msra.mxu1 %v3955_v7 }
 0x369   :  { %3061 = vmatprep.subr.bf16.mxu0 %v3962_v11  ;;  %3093 = vmatprep.subr.bf16.mxu1 %v3970_v17 }
 0x36c   :  { %3063 = vmatpush1.bf16.msra.mxu0 %v3966_v14  ;;  %3095 = vmatpush1.bf16.msra.mxu1 %v3974_v21 }
 0x36d   :  { %3065 = vmatprep.subr.bf16.mxu0 %v3981_v26  ;;  %3097 = vmatprep.subr.bf16.mxu1 %v3989_v35 }
 0x370   :  { %3067 = vmatpush1.bf16.msra.mxu0 %v3985_v31  ;;  %3099 = vmatpush1.bf16.msra.mxu1 %v3993_v39 }
 0x371   :  { %3069 = vmatprep.subr.bf16.mxu0 %v4000_v45  ;;  %3101 = vmatprep.subr.bf16.mxu1 %v4008_v54 }
 0x374   :  { %3071 = vmatpush1.bf16.msra.mxu0 %v4004_v49  ;;  %3103 = vmatpush1.bf16.msra.mxu1 %v4012_v58 }
 0x375   :  { %3073 = vmatprep.subr.bf16.mxu0 %v4019_v0  ;;  %3105 = vmatprep.subr.bf16.mxu1 %v4027_v8 }
 0x378   :  { %3075 = vmatpush1.bf16.msra.mxu0 %v4023_v6  ;;  %3107 = vmatpush1.bf16.msra.mxu1 %v4031_v9 }
 0x379   :  { %3109 = vmatprep.subr.bf16.mxu0 %v3888_v20  ;;  %3141 = vmatprep.subr.bf16.mxu1 %v3894_v27 }
 0x42e   :  { %v1098_v25 = vpop.f32.mrb[6].mxu0  ;;  %v1169_v46 = vpop.f32.mrb[6].mxu1 }
 0x42f   :  { %v3466_v48 = vadd.f32 %v1098_v25, %v4089_v15  ;;  %v1100_v51 = vpop.f32.mrb[7].mxu0  ;;  %v1171_v52 = vpop.f32.mrb[7].mxu1  ;;  %v3482_v62 = vadd.f32 %v1169_v46, %v4107_v42 }
 0x430   :  { %v3467_v55 = vadd.f32 %v1100_v51, %v4092_v16  ;;  %v3483_v59 = vadd.f32 %v1171_v52, %v4100_v36 }
 0x431   :  { %v2552_v5 = vmul.f32 -1.442695, %v3466_v48 }
 0x432   :  { %v2553_v57 = vmul.f32 -1.442695, %v3467_v55  ;;  %v2554_v61 = vmul.f32 -1.442695, %v3483_v59 }
 0x433   :  { %3589 = vpow2.f32 %v2552_v5 }
 0x434   :  { %3591 = vpow2.f32 %v2553_v57 }
 0x435   :  { %3593 = vpow2.f32 %v2554_v61 }
 0x436   :  { %3595 = vtanh.f32 %v3482_v62 }
 0x43d   :  { %v3590_v1 = vpop.eup %3589 }
 0x43e   :  { %v3592_v3 = vpop.eup %3591  ;;  %v1181_v19 = vadd.f32 1.0, %v3590_v1 }
 0x43f   :  { %v1187_v22 = vadd.f32 1.0, %v3592_v3  ;;  %v3594_v23 = vpop.eup %3593 }
 0x440   :  { %3597 = vrcp.f32 %v1181_v19  ;;  %v3596_v28 = vpop.eup %3595  ;;  %v1194_v41 = vadd.f32 1.0, %v3594_v23 }
 0x441   :  { %3599 = vrcp.f32 %v1187_v22 }
 0x442   :  { %3601 = vrcp.f32 %v1194_v41 }
 0x44a   :  { %v3598_v29 = vpop.eup %3597 }
 0x44b   :  { %v3600_v32 = vpop.eup %3599  ;;  %v1198_v33 = vmul.f32 %v3598_v29, %v3596_v28 }
 0x44c   :  { %v1197_v44 = vmul.f32 %v3600_v32, %v4194_v13  ;;  %v3602_v46 = vpop.eup %3601 }
 0x44e   :  { %v4236_v25 = vadd.f32 %v1198_v33, %v1197_v44 }
 0x450   :  { %3603 = vtanh.f32 %v4236_v25 }
 0x45a   :  { %v3604_v48 = vpop.eup %3603 }
 0x45b   :  { %v1201_v51 = vmul.f32 %v3604_v48, %v3602_v46 }
 0x45d   :  { %1267 = vmatmul.mubr.f32.vlgmr.msra.gmra.mrb[8].mxu0 %v1201_v51  ;;  %1338 = vmatmul.mubr.f32.vlgmr.msra.gmra.mrb[8].mxu1 %v1201_v51 }
 0x45e   :  { %3111 = vmatpush1.bf16.msra.mxu0 %v3891_v24  ;;  %3143 = vmatpush1.bf16.msra.mxu1 %v3898_v30 }
 0x45f   :  { %3113 = vmatprep.subr.bf16.mxu0 %v3905_v34  ;;  %3145 = vmatprep.subr.bf16.mxu1 %v3913_v40 }
 0x460   :  { %1436 = vmatprep.mubr.f32.mxu0 %v3787_v4  ;;  %1507 = vmatprep.mubr.f32.mxu1 %v3787_v4 }
 0x462   :  { %3115 = vmatpush1.bf16.msra.mxu0 %v3909_v37  ;;  %3147 = vmatpush1.bf16.msra.mxu1 %v3917_v43 }
 0x463   :  { %3117 = vmatprep.subr.bf16.mxu0 %v3924_v47  ;;  %3149 = vmatprep.subr.bf16.mxu1 %v3932_v53 }
 0x466   :  { %3119 = vmatpush1.bf16.msra.mxu0 %v3928_v50  ;;  %3151 = vmatpush1.bf16.msra.mxu1 %v3936_v56 }
 0x467   :  { %3121 = vmatprep.subr.bf16.mxu0 %v3943_v60  ;;  %3153 = vmatprep.subr.bf16.mxu1 %v3951_v2 }
 0x46a   :  { %3123 = vmatpush1.bf16.msra.mxu0 %v3947_v63  ;;  %3155 = vmatpush1.bf16.msra.mxu1 %v3955_v7 }
 0x46b   :  { %3125 = vmatprep.subr.bf16.mxu0 %v3962_v11  ;;  %3157 = vmatprep.subr.bf16.mxu1 %v3970_v17 }
 0x46e   :  { %3127 = vmatpush1.bf16.msra.mxu0 %v3966_v14  ;;  %3159 = vmatpush1.bf16.msra.mxu1 %v3974_v21 }
 0x46f   :  { %3129 = vmatprep.subr.bf16.mxu0 %v3981_v26  ;;  %3161 = vmatprep.subr.bf16.mxu1 %v3989_v35 }
 0x472   :  { %3131 = vmatpush1.bf16.msra.mxu0 %v3985_v31  ;;  %3163 = vmatpush1.bf16.msra.mxu1 %v3993_v39 }
 0x473   :  { %3133 = vmatprep.subr.bf16.mxu0 %v4000_v45  ;;  %3165 = vmatprep.subr.bf16.mxu1 %v4008_v54 }
 0x476   :  { %3135 = vmatpush1.bf16.msra.mxu0 %v4004_v49  ;;  %3167 = vmatpush1.bf16.msra.mxu1 %v4012_v58 }
 0x477   :  { %3137 = vmatprep.subr.bf16.mxu0 %v4019_v0  ;;  %3169 = vmatprep.subr.bf16.mxu1 %v4027_v8 }
 0x47a   :  { %3139 = vmatpush1.bf16.msra.mxu0 %v4023_v6  ;;  %3171 = vmatpush1.bf16.msra.mxu1 %v4031_v9 }
 0x47b   :  { %3173 = vmatprep.subr.bf16.mxu0 %v3888_v20  ;;  %3205 = vmatprep.subr.bf16.mxu1 %v3894_v27 }
 0x530   :  { %v1268_v13 = vpop.f32.mrb[8].mxu0  ;;  %v1339_v52 = vpop.f32.mrb[8].mxu1 }
 0x531   :  { %v3468_v55 = vadd.f32 %v1268_v13, %v4089_v15  ;;  %v1270_v5 = vpop.f32.mrb[9].mxu0  ;;  %v1341_v57 = vpop.f32.mrb[9].mxu1  ;;  %v3484_v19 = vadd.f32 %v1339_v52, %v4107_v42 }
 0x532   :  { %v3469_v59 = vadd.f32 %v1270_v5, %v4092_v16  ;;  %v3485_v1 = vadd.f32 %v1341_v57, %v4100_v36 }
 0x533   :  { %v2555_v61 = vmul.f32 -1.442695, %v3468_v55 }
 0x534   :  { %v2556_v62 = vmul.f32 -1.442695, %v3469_v59  ;;  %v2557_v3 = vmul.f32 -1.442695, %v3485_v1 }
 0x535   :  { %3605 = vpow2.f32 %v2555_v61 }
 0x536   :  { %3607 = vpow2.f32 %v2556_v62 }
 0x537   :  { %3609 = vpow2.f32 %v2557_v3 }
 0x538   :  { %3611 = vtanh.f32 %v3484_v19 }
 0x53f   :  { %v3606_v22 = vpop.eup %3605 }
 0x540   :  { %v3608_v23 = vpop.eup %3607  ;;  %v1351_v28 = vadd.f32 1.0, %v3606_v22 }
 0x541   :  { %v1357_v29 = vadd.f32 1.0, %v3608_v23  ;;  %v3610_v32 = vpop.eup %3609 }
 0x542   :  { %3613 = vrcp.f32 %v1351_v28  ;;  %v3612_v33 = vpop.eup %3611  ;;  %v1364_v48 = vadd.f32 1.0, %v3610_v32 }
 0x543   :  { %3615 = vrcp.f32 %v1357_v29 }
 0x544   :  { %3617 = vrcp.f32 %v1364_v48 }
 0x54c   :  { %v3614_v41 = vpop.eup %3613 }
 0x54d   :  { %v3616_v44 = vpop.eup %3615  ;;  %v1368_v46 = vmul.f32 %v3614_v41, %v3612_v33 }
 0x54e   :  { %v1367_v51 = vmul.f32 %v3616_v44, %v4236_v25  ;;  %v3618_v52 = vpop.eup %3617 }
 0x550   :  { %v4278_v13 = vadd.f32 %v1368_v46, %v1367_v51 }
 0x552   :  { %3619 = vtanh.f32 %v4278_v13 }
 0x55c   :  { %v3620_v55 = vpop.eup %3619 }
 0x55d   :  { %v1371_v5 = vmul.f32 %v3620_v55, %v3618_v52 }
 0x55f   :  { %1437 = vmatmul.mubr.f32.vlgmr.msra.gmra.mrb[10].mxu0 %v1371_v5  ;;  %1508 = vmatmul.mubr.f32.vlgmr.msra.gmra.mrb[10].mxu1 %v1371_v5 }
 0x560   :  { %3175 = vmatpush1.bf16.msra.mxu0 %v3891_v24  ;;  %3207 = vmatpush1.bf16.msra.mxu1 %v3898_v30 }
 0x561   :  { %3177 = vmatprep.subr.bf16.mxu0 %v3905_v34  ;;  %3209 = vmatprep.subr.bf16.mxu1 %v3913_v40 }
 0x562   :  { %1606 = vmatprep.mubr.f32.mxu0 %v3787_v4  ;;  %1677 = vmatprep.mubr.f32.mxu1 %v3787_v4 }
 0x564   :  { %3179 = vmatpush1.bf16.msra.mxu0 %v3909_v37  ;;  %3211 = vmatpush1.bf16.msra.mxu1 %v3917_v43 }
 0x565   :  { %3181 = vmatprep.subr.bf16.mxu0 %v3924_v47  ;;  %3213 = vmatprep.subr.bf16.mxu1 %v3932_v53 }
 0x568   :  { %3183 = vmatpush1.bf16.msra.mxu0 %v3928_v50  ;;  %3215 = vmatpush1.bf16.msra.mxu1 %v3936_v56 }
 0x569   :  { %3185 = vmatprep.subr.bf16.mxu0 %v3943_v60  ;;  %3217 = vmatprep.subr.bf16.mxu1 %v3951_v2 }
 0x56c   :  { %3187 = vmatpush1.bf16.msra.mxu0 %v3947_v63  ;;  %3219 = vmatpush1.bf16.msra.mxu1 %v3955_v7 }
 0x56d   :  { %3189 = vmatprep.subr.bf16.mxu0 %v3962_v11  ;;  %3221 = vmatprep.subr.bf16.mxu1 %v3970_v17 }
 0x570   :  { %3191 = vmatpush1.bf16.msra.mxu0 %v3966_v14  ;;  %3223 = vmatpush1.bf16.msra.mxu1 %v3974_v21 }
 0x571   :  { %3193 = vmatprep.subr.bf16.mxu0 %v3981_v26  ;;  %3225 = vmatprep.subr.bf16.mxu1 %v3989_v35 }
 0x574   :  { %3195 = vmatpush1.bf16.msra.mxu0 %v3985_v31  ;;  %3227 = vmatpush1.bf16.msra.mxu1 %v3993_v39 }
 0x575   :  { %3197 = vmatprep.subr.bf16.mxu0 %v4000_v45  ;;  %3229 = vmatprep.subr.bf16.mxu1 %v4008_v54 }
 0x578   :  { %3199 = vmatpush1.bf16.msra.mxu0 %v4004_v49  ;;  %3231 = vmatpush1.bf16.msra.mxu1 %v4012_v58 }
 0x579   :  { %3201 = vmatprep.subr.bf16.mxu0 %v4019_v0  ;;  %3233 = vmatprep.subr.bf16.mxu1 %v4027_v8 }
 0x57c   :  { %3203 = vmatpush1.bf16.msra.mxu0 %v4023_v6  ;;  %3235 = vmatpush1.bf16.msra.mxu1 %v4031_v9 }
 0x57d   :  { %3237 = vmatprep.subr.bf16.mxu0 %v3888_v20  ;;  %3269 = vmatprep.subr.bf16.mxu1 %v3894_v27 }
 0x632   :  { %v1438_v25 = vpop.f32.mrb[10].mxu0  ;;  %v1509_v57 = vpop.f32.mrb[10].mxu1 }
 0x633   :  { %v3470_v59 = vadd.f32 %v1438_v25, %v4089_v15  ;;  %v1440_v61 = vpop.f32.mrb[11].mxu0  ;;  %v1511_v62 = vpop.f32.mrb[11].mxu1  ;;  %v3486_v28 = vadd.f32 %v1509_v57, %v4107_v42 }
 0x634   :  { %v3471_v1 = vadd.f32 %v1440_v61, %v4092_v16  ;;  %v3487_v22 = vadd.f32 %v1511_v62, %v4100_v36  ;;  %v145_v61 = vld [vmem:[#allocation5 + $0x20] sm:$0xff] }
 0x635   :  { %v2558_v3 = vmul.f32 -1.442695, %v3470_v59  ;;  %v141_v59 = vld [vmem:[#allocation5] sm:$0xff] }
 0x636   :  { %v2559_v19 = vmul.f32 -1.442695, %v3471_v1  ;;  %v2560_v23 = vmul.f32 -1.442695, %v3487_v22  ;;  %v3302_v1 = vpack.c.bf16 %v145_v61, %v141_v59  ;;  %v182_v59 = vld [vmem:[#allocation5 + $0x148] sm:$0xff] }
 0x637   :  { %3621 = vpow2.f32 %v2558_v3  ;;  %v143_v3 = vld [vmem:[#allocation5 + $0x10] sm:$0xff] }
 0x638   :  { %3623 = vpow2.f32 %v2559_v19  ;;  %v147_v19 = vld [vmem:[#allocation5 + $0x30] sm:$0xff] }
 0x639   :  { %3625 = vpow2.f32 %v2560_v23  ;;  %v3334_v22 = vpack.c.bf16 %v147_v19, %v143_v3  ;;  %v150_v23 = vld [vmem:[#allocation5 + $0x48] sm:$0xff]  ;;  %v188_v3 = vld [vmem:[#allocation5 + $0x178] sm:$0xff] }
 0x63a   :  { %3627 = vtanh.f32 %v3486_v28  ;;  %v154_v28 = vld [vmem:[#allocation5 + $0x68] sm:$0xff] }
 0x641   :  { %v3622_v20 = vpop.eup %3621 }
 0x642   :  { %v3624_v29 = vpop.eup %3623  ;;  %v1521_v27 = vadd.f32 1.0, %v3622_v20  ;;  %v152_v20 = vld [vmem:[#allocation5 + $0x58] sm:$0xff] }
 0x643   :  { %v1527_v32 = vadd.f32 1.0, %v3624_v29  ;;  %v3626_v33 = vpop.eup %3625  ;;  %v3304_v29 = vpack.c.bf16 %v154_v28, %v150_v23  ;;  %v181_v23 = vld [vmem:[#allocation5 + $0x140] sm:$0xff] }
 0x644   :  { %3629 = vrcp.f32 %v1521_v27  ;;  %v3628_v41 = vpop.eup %3627  ;;  %v1534_v51 = vadd.f32 1.0, %v3626_v33  ;;  %v156_v27 = vld [vmem:[#allocation5 + $0x78] sm:$0xff]  ;;  %v153_v33 = vld [vmem:[#allocation5 + $0x60] sm:$0xff] }
 0x645   :  { %3631 = vrcp.f32 %v1527_v32  ;;  %v149_v32 = vld [vmem:[#allocation5 + $0x40] sm:$0xff] }
 0x646   :  { %3633 = vrcp.f32 %v1534_v51  ;;  %v185_v28 = vld [vmem:[#allocation5 + $0x160] sm:$0xff] }
 0x64e   :  { %v3630_v44 = vpop.eup %3629 }
 0x64f   :  { %v3632_v46 = vpop.eup %3631  ;;  %v1538_v48 = vmul.f32 %v3630_v44, %v3628_v41  ;;  %v3336_v41 = vpack.c.bf16 %v156_v27, %v152_v20  ;;  %v3306_v44 = vpack.c.bf16 %v153_v33, %v149_v32  ;;  %v183_v20 = vld [vmem:[#allocation5 + $0x150] sm:$0xff]  ;;  %v190_v32 = vld [vmem:[#allocation5 + $0x188] sm:$0xff] }
 0x650   :  { %v1537_v52 = vmul.f32 %v3632_v46, %v4278_v13  ;;  %v3634_v5 = vpop.eup %3633  ;;  %v148_v13 = vld [vmem:[#allocation5 + $0x38] sm:$0xff]  ;;  %v151_v46 = vld [vmem:[#allocation5 + $0x50] sm:$0xff]  ;;  %v194_v33 = vld [vmem:[#allocation5 + $0x1a8] sm:$0xff] }
 0x651   :  { %v187_v27 = vld [vmem:[#allocation5 + $0x170] sm:$0xff] }
 0x652   :  { %v4320_v55 = vadd.f32 %v1538_v48, %v1537_v52  ;;  %v155_v48 = vld [vmem:[#allocation5 + $0x70] sm:$0xff]  ;;  %v158_v52 = vld [vmem:[#allocation5 + $0x88] sm:$0xff] }
 0x653   :  { %v3338_v51 = vpack.c.bf16 %v155_v48, %v151_v46  ;;  %v192_v46 = vld [vmem:[#allocation5 + $0x198] sm:$0xff] }
 0x654   :  { %3635 = vtanh.f32 %v4320_v55  ;;  %v196_v48 = vld [vmem:[#allocation5 + $0x1b8] sm:$0xff] }
 0x65e   :  { %v3636_v25 = vpop.eup %3635 }
 0x65f   :  { %v1541_v57 = vmul.f32 %v3636_v25, %v3634_v5  ;;  %v160_v5 = vld [vmem:[#allocation5 + $0x98] sm:$0xff] }
 0x661   :  { %1607 = vmatmul.mubr.f32.vlgmr.msra.gmra.mrb[12].mxu0 %v1541_v57  ;;  %1678 = vmatmul.mubr.f32.vlgmr.msra.gmra.mrb[12].mxu1 %v1541_v57  ;;  %v164_v57 = vld [vmem:[#allocation5 + $0xb8] sm:$0xff] }
 0x662   :  { %3239 = vmatpush1.bf16.msra.mxu0 %v3891_v24  ;;  %3271 = vmatpush1.bf16.msra.mxu1 %v3898_v30 }
 0x663   :  { %3241 = vmatprep.subr.bf16.mxu0 %v3905_v34  ;;  %3273 = vmatprep.subr.bf16.mxu1 %v3913_v40 }
 0x664   :  { %1776 = vmatprep.mubr.f32.mxu0 %v3787_v4  ;;  %1847 = vmatprep.mubr.f32.mxu1 %v3787_v4 }
 0x666   :  { %3243 = vmatpush1.bf16.msra.mxu0 %v3909_v37  ;;  %3275 = vmatpush1.bf16.msra.mxu1 %v3917_v43 }
 0x667   :  { %3245 = vmatprep.subr.bf16.mxu0 %v3924_v47  ;;  %3277 = vmatprep.subr.bf16.mxu1 %v3932_v53 }
 0x66a   :  { %3247 = vmatpush1.bf16.msra.mxu0 %v3928_v50  ;;  %3279 = vmatpush1.bf16.msra.mxu1 %v3936_v56 }
 0x66b   :  { %3249 = vmatprep.subr.bf16.mxu0 %v3943_v60  ;;  %3281 = vmatprep.subr.bf16.mxu1 %v3951_v2 }
 0x66e   :  { %3251 = vmatpush1.bf16.msra.mxu0 %v3947_v63  ;;  %3283 = vmatpush1.bf16.msra.mxu1 %v3955_v7 }
 0x66f   :  { %3253 = vmatprep.subr.bf16.mxu0 %v3962_v11  ;;  %3285 = vmatprep.subr.bf16.mxu1 %v3970_v17 }
 0x672   :  { %3255 = vmatpush1.bf16.msra.mxu0 %v3966_v14  ;;  %3287 = vmatpush1.bf16.msra.mxu1 %v3974_v21 }
 0x673   :  { %3257 = vmatprep.subr.bf16.mxu0 %v3981_v26  ;;  %3289 = vmatprep.subr.bf16.mxu1 %v3989_v35 }
 0x676   :  { %3259 = vmatpush1.bf16.msra.mxu0 %v3985_v31  ;;  %3291 = vmatpush1.bf16.msra.mxu1 %v3993_v39 }
 0x677   :  { %3261 = vmatprep.subr.bf16.mxu0 %v4000_v45  ;;  %3293 = vmatprep.subr.bf16.mxu1 %v4008_v54 }
 0x67a   :  { %3263 = vmatpush1.bf16.msra.mxu0 %v4004_v49  ;;  %3295 = vmatpush1.bf16.msra.mxu1 %v4012_v58 }
 0x67b   :  { %3265 = vmatprep.subr.bf16.mxu0 %v4019_v0  ;;  %3297 = vmatprep.subr.bf16.mxu1 %v4027_v8  ;;  %v142_v0 = vld [vmem:[#allocation5 + $0x8] sm:$0xff]  ;;  %v144_v8 = vld [vmem:[#allocation5 + $0x18] sm:$0xff] }
 0x67c   :  { %v3332_v62 = vpack.c.bf16 %v148_v13, %v144_v8  ;;  %v179_v13 = vld [vmem:[#allocation5 + $0x130] sm:$0xff] }
 0x67e   :  { %3267 = vmatpush1.bf16.msra.mxu0 %v4023_v6  ;;  %3299 = vmatpush1.bf16.msra.mxu1 %v4031_v9  ;;  %v146_v6 = vld [vmem:[#allocation5 + $0x28] sm:$0xff] }
 0x67f   :  { %v3300_v9 = vpack.c.bf16 %v146_v6, %v142_v0  ;;  %3333 = vmatprep.subr.bf16.mxu1 %v3332_v62  ;;  %v177_v0 = vld [vmem:[#allocation5 + $0x120] sm:$0xff]  ;;  %v186_v62 = vld [vmem:[#allocation5 + $0x168] sm:$0xff] }
 0x680   :  { %v3320_v19 = vpack.c.bf16 %v186_v62, %v182_v59 }
 0x681   :  { %3301 = vmatprep.subr.bf16.mxu0 %v3300_v9  ;;  %v175_v9 = vld [vmem:[#allocation5 + $0x110] sm:$0xff] }
 0x682   :  { %v3350_v61 = vpack.c.bf16 %v179_v13, %v175_v9 }
 0x734   :  { %v1608_v24 = vpop.f32.mrb[12].mxu0  ;;  %v1679_v30 = vpop.f32.mrb[12].mxu1 }
 0x735   :  { %v3472_v34 = vadd.f32 %v1608_v24, %v4089_v15  ;;  %v1610_v37 = vpop.f32.mrb[13].mxu0  ;;  %v1681_v40 = vpop.f32.mrb[13].mxu1  ;;  %v3488_v60 = vadd.f32 %v1679_v30, %v4107_v42  ;;  %v157_v24 = vld [vmem:[#allocation5 + $0x80] sm:$0xff] }
 0x736   :  { %v3473_v43 = vadd.f32 %v1610_v37, %v4092_v16  ;;  %v3489_v53 = vadd.f32 %v1681_v40, %v4100_v36  ;;  %v161_v30 = vld [vmem:[#allocation5 + $0xa0] sm:$0xff]  ;;  %v159_v40 = vld [vmem:[#allocation5 + $0x90] sm:$0xff] }
 0x737   :  { %v2561_v47 = vmul.f32 -1.442695, %v3472_v34  ;;  %v3340_v34 = vpack.c.bf16 %v164_v57, %v160_v5  ;;  %v3310_v37 = vpack.c.bf16 %v161_v30, %v157_v24  ;;  %v191_v5 = vld [vmem:[#allocation5 + $0x190] sm:$0xff]  ;;  %v198_v24 = vld [vmem:[#allocation5 + $0x1c8] sm:$0xff] }
 0x738   :  { %v2562_v50 = vmul.f32 -1.442695, %v3473_v43  ;;  %v2563_v56 = vmul.f32 -1.442695, %v3489_v53  ;;  %v163_v43 = vld [vmem:[#allocation5 + $0xb0] sm:$0xff]  ;;  %v170_v53 = vld [vmem:[#allocation5 + $0xe8] sm:$0xff] }
 0x739   :  { %3637 = vpow2.f32 %v2561_v47  ;;  %v3342_v47 = vpack.c.bf16 %v163_v43, %v159_v40  ;;  %v202_v30 = vld [vmem:[#allocation5 + $0x1e8] sm:$0xff]  ;;  %v204_v43 = vld [vmem:[#allocation5 + $0x1f8] sm:$0xff] }
 0x73a   :  { %3639 = vpow2.f32 %v2562_v50  ;;  %v166_v50 = vld [vmem:[#allocation5 + $0xc8] sm:$0xff]  ;;  %v3328_v40 = vpack.c.bf16 %v202_v30, %v198_v24  ;;  %v218_v30 = vld [vmem:[%s4603_s8 + $0x60] sm:$0xff] }
 0x73b   :  { %3641 = vpow2.f32 %v2563_v56  ;;  %v168_v56 = vld [vmem:[#allocation5 + $0xd8] sm:$0xff] }
 0x73c   :  { %3643 = vtanh.f32 %v3488_v60  ;;  %v3312_v60 = vpack.c.bf16 %v170_v53, %v166_v50  ;;  %v201_v50 = vld [vmem:[#allocation5 + $0x1e0] sm:$0xff] }
 0x743   :  { %v3638_v63 = vpop.eup %3637 }
 0x744   :  { %v3640_v2 = vpop.eup %3639  ;;  %v1691_v7 = vadd.f32 1.0, %v3638_v63  ;;  %v172_v63 = vld [vmem:[#allocation5 + $0xf8] sm:$0xff] }
 0x745   :  { %v1697_v11 = vadd.f32 1.0, %v3640_v2  ;;  %v3642_v14 = vpop.eup %3641  ;;  %v165_v2 = vld [vmem:[#allocation5 + $0xc0] sm:$0xff] }
 0x746   :  { %3645 = vrcp.f32 %v1691_v7  ;;  %v3644_v17 = vpop.eup %3643  ;;  %v1704_v35 = vadd.f32 1.0, %v3642_v14  ;;  %v169_v7 = vld [vmem:[#allocation5 + $0xe0] sm:$0xff] }
 0x747   :  { %3647 = vrcp.f32 %v1697_v11  ;;  %v3344_v11 = vpack.c.bf16 %v172_v63, %v168_v56  ;;  %v3314_v14 = vpack.c.bf16 %v169_v7, %v165_v2  ;;  %v199_v56 = vld [vmem:[#allocation5 + $0x1d0] sm:$0xff]  ;;  %v3788_v7 = vmov 1  }
 0x748   :  { %3649 = vrcp.f32 %v1704_v35  ;;  %v178_v35 = vld [vmem:[#allocation5 + $0x128] sm:$0xff]  ;;  %3537 = vset.pattern.permute.xlu0 %v3788_v7 }
 0x750   :  { %v3646_v21 = vpop.eup %3645 }
 0x751   :  { %v3648_v26 = vpop.eup %3647  ;;  %v1708_v31 = vmul.f32 %v3646_v21, %v3644_v17  ;;  %v167_v17 = vld [vmem:[#allocation5 + $0xd0] sm:$0xff] }
 0x752   :  { %v1707_v39 = vmul.f32 %v3648_v26, %v4320_v55  ;;  %v3650_v49 = vpop.eup %3649  ;;  %v162_v55 = vld [vmem:[#allocation5 + $0xa8] sm:$0xff]  ;;  %v171_v21 = vld [vmem:[#allocation5 + $0xf0] sm:$0xff] }
 0x753   :  { %v3308_v25 = vpack.c.bf16 %v162_v55, %v158_v52  ;;  %v3346_v26 = vpack.c.bf16 %v171_v21, %v167_v17  ;;  %v3356_v52 = vpack.c.bf16 %v196_v48, %v192_v46  ;;  %v193_v55 = vld [vmem:[#allocation5 + $0x1a0] sm:$0xff]  ;;  %v212_v46 = vld [vmem:[%s4603_s8 + $0x30] sm:$0xff]  ;;  %v213_v48 = vld [vmem:[%s4603_s8 + $0x38] sm:$0xff] }
 0x754   :  { %v4360_v45 = vadd.f32 %v1708_v31, %v1707_v39  ;;  %v174_v31 = vld [vmem:[#allocation5 + $0x108] sm:$0xff]  ;;  %v176_v39 = vld [vmem:[#allocation5 + $0x118] sm:$0xff] }
 0x756   :  { %3651 = vtanh.f32 %v4360_v45 }
 0x760   :  { %v3652_v54 = vpop.eup %3651 }
 0x761   :  { %v1711_v58 = vmul.f32 %v3652_v54, %v3650_v49  ;;  %v3316_v49 = vpack.c.bf16 %v178_v35, %v174_v31  ;;  %v180_v54 = vld [vmem:[#allocation5 + $0x138] sm:$0xff] }
 0x762   :  { %v3348_v6 = vpack.c.bf16 %v180_v54, %v176_v39 }
 0x763   :  { %1777 = vmatmul.mubr.f32.vlgmr.msra.gmra.mrb[14].mxu0 %v1711_v58  ;;  %1848 = vmatmul.mubr.f32.vlgmr.msra.gmra.mrb[14].mxu1 %v1711_v58  ;;  %v173_v58 = vld [vmem:[#allocation5 + $0x100] sm:$0xff] }
 0x764   :  { %1967 = vmatprep.mubr.f32.mxu0 %v3787_v4  ;;  %2038 = vmatprep.mubr.f32.mxu1 %v3787_v4  ;;  %v3318_v8 = vpack.c.bf16 %v177_v0, %v173_v58 }
 0x765   :  { %3303 = vmatpush1.bf16.msra.mxu0 %v3302_v1  ;;  %3335 = vmatpush1.bf16.msra.mxu1 %v3334_v22  ;;  %v184_v1 = vld [vmem:[#allocation5 + $0x158] sm:$0xff] }
 0x766   :  { %3305 = vmatprep.subr.bf16.mxu0 %v3304_v29  ;;  %3337 = vmatprep.subr.bf16.mxu1 %v3336_v41  ;;  %v3352_v22 = vpack.c.bf16 %v188_v3, %v184_v1  ;;  %v3322_v29 = vpack.c.bf16 %v185_v28, %v181_v23  ;;  %v3354_v41 = vpack.c.bf16 %v187_v27, %v183_v20  ;;  %v206_v23 = vld [vmem:[%s4603_s8] sm:$0xff]  ;;  %v207_v28 = vld [vmem:[%s4603_s8 + $0x8] sm:$0xff]  ;;  %v209_v27 = vld [vmem:[%s4603_s8 + $0x18] sm:$0xff] }
 0x767   :  { %v4382_v20 = vpack.c.bf16 %v207_v28, %v206_v23 }
 0x769   :  { %3307 = vmatpush1.bf16.msra.mxu0 %v3306_v44  ;;  %3339 = vmatpush1.bf16.msra.mxu1 %v3338_v51  ;;  %v3324_v44 = vpack.c.bf16 %v194_v33, %v190_v32  ;;  %v189_v51 = vld [vmem:[#allocation5 + $0x180] sm:$0xff] }
 0x76a   :  { %3309 = vmatprep.subr.bf16.mxu0 %v3308_v25  ;;  %3341 = vmatprep.subr.bf16.mxu1 %v3340_v34  ;;  %v195_v25 = vld [vmem:[#allocation5 + $0x1b0] sm:$0xff]  ;;  %v3326_v57 = vpack.c.bf16 %v193_v55, %v189_v51  ;;  %v200_v34 = vld [vmem:[#allocation5 + $0x1d8] sm:$0xff]  ;;  %v4420_v51 = vpack.c.bf16 %v213_v48, %v212_v46  ;;  %v215_v55 = vld [vmem:[%s4603_s8 + $0x48] sm:$0xff] }
 0x76b   :  { %v3360_v53 = vpack.c.bf16 %v204_v43, %v200_v34  ;;  %v210_v33 = vld [vmem:[%s4603_s8 + $0x20] sm:$0xff]  ;;  %v219_v34 = vld [vmem:[%s4603_s8 + $0x68] sm:$0xff]  ;;  %v221_v43 = vld [vmem:[%s4603_s8 + $0x78] sm:$0xff] }
 0x76d   :  { %3311 = vmatpush1.bf16.msra.mxu0 %v3310_v37  ;;  %3343 = vmatpush1.bf16.msra.mxu1 %v3342_v47  ;;  %v3358_v37 = vpack.c.bf16 %v195_v25, %v191_v5  ;;  %v197_v47 = vld [vmem:[#allocation5 + $0x1c0] sm:$0xff]  ;;  %v216_v25 = vld [vmem:[%s4603_s8 + $0x50] sm:$0xff] }
 0x76e   :  { %3313 = vmatprep.subr.bf16.mxu0 %v3312_v60  ;;  %3345 = vmatprep.subr.bf16.mxu1 %v3344_v11  ;;  %v203_v60 = vld [vmem:[#allocation5 + $0x1f0] sm:$0xff]  ;;  %v3330_v63 = vpack.c.bf16 %v201_v50, %v197_v47  ;;  %v140_v50 = vld [vmem:[%s4600_s5] sm:$0xf] }
 0x76f   :  { %v3362_v2 = vpack.c.bf16 %v203_v60, %v199_v56  ;;  %v3733_v11 = vld [vmem:[%s4595_s0 + $0x38] sm:$0xff]  ;;  %v4485_v56 = vrot.slane %v140_v50, %v4080_v10  ;;  %v4488_v60 = vrot.slane %v140_v50, %v4083_v12 }
 0x770   :  { %2067 = vperm.xlu0 %3537, %v3733_v11  }
 0x771   :  { %3315 = vmatpush1.bf16.msra.mxu0 %v3314_v14  ;;  %3347 = vmatpush1.bf16.msra.mxu1 %v3346_v26 }
 0x772   :  { %3317 = vmatprep.subr.bf16.mxu0 %v3316_v49  ;;  %3349 = vmatprep.subr.bf16.mxu1 %v3348_v6 }
 0x775   :  { %3319 = vmatpush1.bf16.msra.mxu0 %v3318_v8  ;;  %3351 = vmatpush1.bf16.msra.mxu1 %v3350_v61 }
 0x776   :  { %3321 = vmatprep.subr.bf16.mxu0 %v3320_v19  ;;  %3353 = vmatprep.subr.bf16.mxu1 %v3352_v22 }
 0x779   :  { %3323 = vmatpush1.bf16.msra.mxu0 %v3322_v29  ;;  %3355 = vmatpush1.bf16.msra.mxu1 %v3354_v41  ;;  %v208_v29 = vld [vmem:[%s4603_s8 + $0x10] sm:$0xff]  ;;  %v211_v41 = vld [vmem:[%s4603_s8 + $0x28] sm:$0xff] }
 0x77a   :  { %3325 = vmatprep.subr.bf16.mxu0 %v3324_v44  ;;  %3357 = vmatprep.subr.bf16.mxu1 %v3356_v52  ;;  %v4396_v32 = vpack.c.bf16 %v209_v27, %v208_v29  ;;  %v4408_v44 = vpack.c.bf16 %v211_v41, %v210_v33  ;;  %v214_v52 = vld [vmem:[%s4603_s8 + $0x40] sm:$0xff] }
 0x77b   :  { %v4429_v5 = vpack.c.bf16 %v215_v55, %v214_v52  ;;  %v3791_v52 = vmov 0   ;;  %v4534_v55 = vld [vmem:[#allocation2] ss:$0 sm:$0xff] }
 0x77c   :  { %3538 = vset.pattern.permute.xlu0 %v3791_v52  ;;  %3539 = vset.pattern.permute.xlu1 %v3791_v52 }
 0x77d   :  { %3327 = vmatpush1.bf16.msra.mxu0 %v3326_v57  ;;  %3359 = vmatpush1.bf16.msra.mxu1 %v3358_v37  ;;  %v217_v57 = vld [vmem:[%s4603_s8 + $0x58] sm:$0xff]  ;;  %v4457_v37 = vpack.c.bf16 %v219_v34, %v218_v30 }
 0x77e   :  { %3329 = vmatprep.subr.bf16.mxu0 %v3328_v40  ;;  %3361 = vmatprep.subr.bf16.mxu1 %v3360_v53  ;;  %v4445_v24 = vpack.c.bf16 %v217_v57, %v216_v25  ;;  %v220_v40 = vld [vmem:[%s4603_s8 + $0x70] sm:$0xff]  ;;  %v205_v53 = vld [vmem:[%s4602_s7] sm:$0xf] }
 0x77f   :  { %v4469_v47 = vpack.c.bf16 %v221_v43, %v220_v40  ;;  %v1890_v7 = vrot.slane %v205_v53, %v4083_v12 }
 0x781   :  { %3331 = vmatpush1.bf16.msra.mxu0 %v3330_v63  ;;  %3363 = vmatpush1.bf16.msra.mxu1 %v3362_v2  ;;  %v1886_v2 = vrot.slane %v205_v53, %v4080_v10 }
 0x7ef   :  { %v2068_v63 = vpop.permute.xlu0 %2067 }
 0x7f0   :  { %v2070_v11 = vmul.f32 %v2068_v63, %v4485_v56 }
 0x836   :  { %v1778_v14 = vpop.f32.mrb[14].mxu0  ;;  %v1849_v17 = vpop.f32.mrb[14].mxu1 }
 0x837   :  { %v3474_v21 = vadd.f32 %v1778_v14, %v4089_v15  ;;  %v1780_v26 = vpop.f32.mrb[15].mxu0  ;;  %v1851_v31 = vpop.f32.mrb[15].mxu1  ;;  %v3490_v0 = vadd.f32 %v1849_v17, %v4107_v42  ;;  %v2071_v14 = vmul.f32 %v2068_v63, %v4488_v60 }
 0x838   :  { %v3475_v35 = vadd.f32 %v1780_v26, %v4092_v16  ;;  %v3491_v54 = vadd.f32 %v1851_v31, %v4100_v36 }
 0x839   :  { %v2564_v39 = vmul.f32 -1.442695, %v3474_v21 }
 0x83a   :  { %v2565_v49 = vmul.f32 -1.442695, %v3475_v35  ;;  %v2566_v58 = vmul.f32 -1.442695, %v3491_v54  ;;  %v1898_v54 = vrot.slane %v205_v53, %v4095_v18 }
 0x83b   :  { %3653 = vpow2.f32 %v2564_v39  ;;  %v4497_v39 = vrot.slane %v140_v50, %v4095_v18 }
 0x83c   :  { %3655 = vpow2.f32 %v2565_v49 }
 0x83d   :  { %3657 = vpow2.f32 %v2566_v58 }
 0x83e   :  { %3659 = vtanh.f32 %v3490_v0  ;;  %v2073_v0 = vmul.f32 %v2068_v63, %v4497_v39 }
 0x845   :  { %v3654_v6 = vpop.eup %3653 }
 0x846   :  { %v3656_v8 = vpop.eup %3655  ;;  %v1861_v9 = vadd.f32 1.0, %v3654_v6 }
 0x847   :  { %v1867_v13 = vadd.f32 1.0, %v3656_v8  ;;  %v3658_v15 = vpop.eup %3657 }
 0x848   :  { %3661 = vrcp.f32 %v1861_v9  ;;  %v3660_v59 = vpop.eup %3659  ;;  %v1874_v1 = vadd.f32 1.0, %v3658_v15  ;;  %v4508_v9 = vrot.slane %v140_v50, %v4103_v38 }
 0x849   :  { %3663 = vrcp.f32 %v1867_v13  ;;  %v1894_v13 = vrot.slane %v205_v53, %v4103_v38 }
 0x84a   :  { %3665 = vrcp.f32 %v1874_v1  ;;  %v2072_v18 = vmul.f32 %v2068_v63, %v4508_v9 }
 0x852   :  { %v3662_v16 = vpop.eup %3661 }
 0x853   :  { %v3664_v61 = vpop.eup %3663  ;;  %v1878_v62 = vmul.f32 %v3662_v16, %v3660_v59 }
 0x854   :  { %v1877_v3 = vmul.f32 %v3664_v61, %v4360_v45  ;;  %v3666_v42 = vpop.eup %3665  ;;  %v3789_v45 = vmov 0.0|0.0  }
 0x855   :  { %3364 = vmatprep.subr.bf16.mxu0 %v3789_v45  ;;  %3388 = vmatprep.subr.bf16.mxu1 %v3789_v45 }
 0x856   :  { %v4373_v36 = vadd.f32 %v1878_v62, %v1877_v3 }
 0x858   :  { %3667 = vtanh.f32 %v4373_v36 }
 0x862   :  { %v3668_v19 = vpop.eup %3667 }
 0x863   :  { %v1881_v22 = vmul.f32 %v3668_v19, %v3666_v42 }
 0x865   :  { %1968 = vmatmul.mubr.f32.vlgmr.msra.gmra.mrb[16].mxu0 %v1881_v22  ;;  %2039 = vmatmul.mubr.f32.vlgmr.msra.gmra.mrb[16].mxu1 %v1881_v22 }
 0x866   :  { %3366 = vmatpush3.bf16.msra.mxu0 %v4382_v20  ;;  %3390 = vmatpush3.bf16.msra.mxu1 %v4382_v20 }
 0x867   :  { %3367 = vmatprep.subr.bf16.mxu0 %v3789_v45  ;;  %3391 = vmatprep.subr.bf16.mxu1 %v3789_v45 }
 0x868   :  { %2680 = vmatprep.mubr.msk.f32.mxu0 %vm3790_vm2, %v3787_v4  ;;  %2715 = vmatprep.mubr.msk.f32.mxu1 %vm3790_vm2, %v3787_v4 }
 0x86a   :  { %3369 = vmatpush3.bf16.msra.mxu0 %v4396_v32  ;;  %3393 = vmatpush3.bf16.msra.mxu1 %v4396_v32 }
 0x86b   :  { %3370 = vmatprep.subr.bf16.mxu0 %v3789_v45  ;;  %3394 = vmatprep.subr.bf16.mxu1 %v3789_v45 }
 0x86e   :  { %3372 = vmatpush3.bf16.msra.mxu0 %v4408_v44  ;;  %3396 = vmatpush3.bf16.msra.mxu1 %v4408_v44 }
 0x86f   :  { %3373 = vmatprep.subr.bf16.mxu0 %v3789_v45  ;;  %3397 = vmatprep.subr.bf16.mxu1 %v3789_v45 }
 0x872   :  { %3375 = vmatpush3.bf16.msra.mxu0 %v4420_v51  ;;  %3399 = vmatpush3.bf16.msra.mxu1 %v4420_v51 }
 0x873   :  { %3376 = vmatprep.subr.bf16.mxu0 %v3789_v45  ;;  %3400 = vmatprep.subr.bf16.mxu1 %v3789_v45 }
 0x876   :  { %3378 = vmatpush3.bf16.msra.mxu0 %v4429_v5  ;;  %3402 = vmatpush3.bf16.msra.mxu1 %v4429_v5 }
 0x877   :  { %3379 = vmatprep.subr.bf16.mxu0 %v3789_v45  ;;  %3403 = vmatprep.subr.bf16.mxu1 %v3789_v45 }
 0x87a   :  { %3381 = vmatpush3.bf16.msra.mxu0 %v4445_v24  ;;  %3405 = vmatpush3.bf16.msra.mxu1 %v4445_v24 }
 0x87b   :  { %3382 = vmatprep.subr.bf16.mxu0 %v3789_v45  ;;  %3406 = vmatprep.subr.bf16.mxu1 %v3789_v45 }
 0x87e   :  { %3384 = vmatpush3.bf16.msra.mxu0 %v4457_v37  ;;  %3408 = vmatpush3.bf16.msra.mxu1 %v4457_v37 }
 0x87f   :  { %3385 = vmatprep.subr.bf16.mxu0 %v3789_v45  ;;  %3409 = vmatprep.subr.bf16.mxu1 %v3789_v45 }
 0x882   :  { %3387 = vmatpush3.bf16.msra.mxu0 %v4469_v47  ;;  %3411 = vmatpush3.bf16.msra.mxu1 %v4469_v47 }
 0x883   :  { %3412 = vmatprep.subr.bf16.mxu0 %v3789_v45  ;;  %3436 = vmatprep.subr.bf16.mxu1 %v3789_v45 }
 0x938   :  { %v1969_v17 = vpop.f32.mrb[16].mxu0  ;;  %v2040_v21 = vpop.f32.mrb[16].mxu1 }
 0x939   :  { %v4494_v26 = vadd.f32 %v1969_v17, %v1886_v2  ;;  %v1971_v31 = vpop.f32.mrb[17].mxu0  ;;  %v2042_v35 = vpop.f32.mrb[17].mxu1  ;;  %v4513_v59 = vadd.f32 %v2040_v21, %v1894_v13 }
 0x93a   :  { %v4499_v49 = vadd.f32 %v1971_v31, %v1890_v7  ;;  %v4505_v8 = vadd.f32 %v2042_v35, %v1898_v54 }
 0x93b   :  { %v2074_v10 = vadd.f32 %v2070_v11, %v4494_v26  ;;  %v2076_v61 = vadd.f32 %v2072_v18, %v4513_v59 }
 0x93c   :  { %v2075_v12 = vadd.f32 %v2071_v14, %v4499_v49  ;;  %v2077_v15 = vadd.f32 %v2073_v0, %v4505_v8 }
 0x93d   :  { %v2567_v58 = vmul.f32 -1.442695, %v2074_v10 }
 0x93e   :  { %v2568_v6 = vmul.f32 -1.442695, %v2075_v12  ;;  %v2569_v16 = vmul.f32 -1.442695, %v2077_v15 }
 0x93f   :  { %3669 = vpow2.f32 %v2567_v58 }
 0x940   :  { %3671 = vpow2.f32 %v2568_v6 }
 0x941   :  { %3673 = vpow2.f32 %v2569_v16 }
 0x942   :  { %3675 = vtanh.f32 %v2076_v61 }
 0x949   :  { %v3670_v62 = vpop.eup %3669 }
 0x94a   :  { %v3672_v1 = vpop.eup %3671  ;;  %v2081_v3 = vadd.f32 1.0, %v3670_v62 }
 0x94b   :  { %v2087_v42 = vadd.f32 1.0, %v3672_v1  ;;  %v3674_v19 = vpop.eup %3673 }
 0x94c   :  { %3677 = vrcp.f32 %v2081_v3  ;;  %v3676_v38 = vpop.eup %3675  ;;  %v2094_v29 = vadd.f32 1.0, %v3674_v19 }
 0x94d   :  { %3679 = vrcp.f32 %v2087_v42 }
 0x94e   :  { %3681 = vrcp.f32 %v2094_v29 }
 0x956   :  { %v3678_v22 = vpop.eup %3677 }
 0x957   :  { %v3680_v23 = vpop.eup %3679  ;;  %v2098_v28 = vmul.f32 %v3678_v22, %v3676_v38 }
 0x958   :  { %v2097_v27 = vmul.f32 %v3680_v23, %v4373_v36  ;;  %v3682_v41 = vpop.eup %3681 }
 0x95a   :  { %v2099_v33 = vadd.f32 %v2098_v28, %v2097_v27 }
 0x95c   :  { %3683 = vtanh.f32 %v2099_v33 }
 0x966   :  { %v3684_v46 = vpop.eup %3683 }
 0x967   :  { %v2101_v48 = vmul.f32 %v3684_v46, %v3682_v41 }
 0x969   :  { %2681 = vmatmul.mubr.f32.vlgmr.msra.gmra.mrb[18].mxu0 %v2101_v48 }
 0x96a   :  { %3414 = vmatpush3.bf16.msra.mxu0 %v4382_v20  ;;  %2750 = vmatprep.mubr.msk.f32.mxu0 %vm3790_vm2, %v3787_v4 }
 0x96b   :  { %3415 = vmatprep.subr.bf16.mxu0 %v3789_v45 }
 0x96e   :  { %3417 = vmatpush3.bf16.msra.mxu0 %v4396_v32 }
 0x96f   :  { %3418 = vmatprep.subr.bf16.mxu0 %v3789_v45 }
 0x972   :  { %3420 = vmatpush3.bf16.msra.mxu0 %v4408_v44 }
 0x973   :  { %3421 = vmatprep.subr.bf16.mxu0 %v3789_v45 }
 0x976   :  { %3423 = vmatpush3.bf16.msra.mxu0 %v4420_v51 }
 0x977   :  { %3424 = vmatprep.subr.bf16.mxu0 %v3789_v45 }
 0x97a   :  { %3426 = vmatpush3.bf16.msra.mxu0 %v4429_v5 }
 0x97b   :  { %3427 = vmatprep.subr.bf16.mxu0 %v3789_v45 }
 0x97e   :  { %3429 = vmatpush3.bf16.msra.mxu0 %v4445_v24 }
 0x97f   :  { %3430 = vmatprep.subr.bf16.mxu0 %v3789_v45 }
 0x982   :  { %3432 = vmatpush3.bf16.msra.mxu0 %v4457_v37 }
 0x983   :  { %3433 = vmatprep.subr.bf16.mxu0 %v3789_v45 }
 0x986   :  { %3435 = vmatpush3.bf16.msra.mxu0 %v4469_v47 }
 0xa3c   :  { %v2174_v25 = vpop.f32.mrb[18].mxu0 }
 0xa3d   :  { %v4537_v57 = vadd.f32 %v4534_v55, %v2174_v25  ;;  %v2682_v30 = vpop.f32.mrb[19].mxu0 }
 0xa3f   :  { %2180 = vperm.xlu0 %3538, %v4537_v57  }
 0xabe   :  { %v2181_v34 = vpop.permute.xlu0 %2180 }
 0xabf   :  { %v2183_v40 = vmul.f32 %v2181_v34, %v4485_v56  ;;  %v2184_v43 = vmul.f32 %v2181_v34, %v4488_v60  ;;  %v2186_v7 = vmul.f32 %v2181_v34, %v4497_v39  ;;  %v2185_v14 = vmul.f32 %v2181_v34, %v4508_v9 }
 0xac1   :  { %v2187_v50 = vadd.f32 %v2183_v40, %v4494_v26  ;;  %v2188_v53 = vadd.f32 %v2184_v43, %v4499_v49  ;;  %v2190_v11 = vadd.f32 %v2186_v7, %v4505_v8  ;;  %v2189_v21 = vadd.f32 %v2185_v14, %v4513_v59 }
 0xac3   :  { %v2571_v63 = vmul.f32 -1.442695, %v2187_v50  ;;  %v2572_v2 = vmul.f32 -1.442695, %v2188_v53  ;;  %v2573_v17 = vmul.f32 -1.442695, %v2190_v11 }
 0xac5   :  { %3685 = vpow2.f32 %v2571_v63 }
 0xac6   :  { %3687 = vpow2.f32 %v2572_v2 }
 0xac7   :  { %3689 = vpow2.f32 %v2573_v17 }
 0xac8   :  { %3691 = vtanh.f32 %v2189_v21 }
 0xacf   :  { %v3686_v31 = vpop.eup %3685 }
 0xad0   :  { %v3688_v35 = vpop.eup %3687  ;;  %v2194_v54 = vadd.f32 1.0, %v3686_v31 }
 0xad1   :  { %v2200_v10 = vadd.f32 1.0, %v3688_v35  ;;  %v3690_v12 = vpop.eup %3689 }
 0xad2   :  { %3693 = vrcp.f32 %v2194_v54  ;;  %v3692_v58 = vpop.eup %3691  ;;  %v2207_v13 = vadd.f32 1.0, %v3690_v12 }
 0xad3   :  { %3695 = vrcp.f32 %v2200_v10 }
 0xad4   :  { %3697 = vrcp.f32 %v2207_v13 }
 0xadc   :  { %v3694_v0 = vpop.eup %3693 }
 0xadd   :  { %v3696_v6 = vpop.eup %3695  ;;  %v2211_v15 = vmul.f32 %v3694_v0, %v3692_v58 }
 0xade   :  { %v2210_v18 = vmul.f32 %v3696_v6, %v4373_v36  ;;  %v3698_v61 = vpop.eup %3697 }
 0xae0   :  { %v2212_v16 = vadd.f32 %v2211_v15, %v2210_v18 }
 0xae2   :  { %3699 = vtanh.f32 %v2212_v16 }
 0xaec   :  { %v3700_v62 = vpop.eup %3699 }
 0xaed   :  { %v2214_v1 = vmul.f32 %v3700_v62, %v3698_v61 }
 0xaef   :  { %2716 = vmatmul.mubr.f32.vlgmr.msra.gmra.mrb[18].mxu1 %v2214_v1 }
 0xaf0   :  { %3438 = vmatpush3.bf16.msra.mxu1 %v4382_v20  ;;  %2785 = vmatprep.mubr.msk.f32.mxu1 %vm3790_vm2, %v3787_v4 }
 0xaf1   :  { %3439 = vmatprep.subr.bf16.mxu1 %v3789_v45 }
 0xaf4   :  { %3441 = vmatpush3.bf16.msra.mxu1 %v4396_v32 }
 0xaf5   :  { %3442 = vmatprep.subr.bf16.mxu1 %v3789_v45 }
 0xaf8   :  { %3444 = vmatpush3.bf16.msra.mxu1 %v4408_v44  ;;  %v73_v44 = vld [vmem:[%s4596_s1 + $0x10] sm:$0xff]  ;;  %s3793_s1 = smov 2  }
 0xaf9   :  { %3445 = vmatprep.subr.bf16.mxu1 %v3789_v45 }
 0xafc   :  { %3447 = vmatpush3.bf16.msra.mxu1 %v4420_v51 }
 0xafd   :  { %3448 = vmatprep.subr.bf16.mxu1 %v3789_v45 }
 0xb00   :  { %3450 = vmatpush3.bf16.msra.mxu1 %v4429_v5 }
 0xb01   :  { %3451 = vmatprep.subr.bf16.mxu1 %v3789_v45 }
 0xb04   :  { %3453 = vmatpush3.bf16.msra.mxu1 %v4445_v24 }
 0xb05   :  { %3454 = vmatprep.subr.bf16.mxu1 %v3789_v45 }
 0xb08   :  { %3456 = vmatpush3.bf16.msra.mxu1 %v4457_v37 }
 0xb09   :  { %3457 = vmatprep.subr.bf16.mxu1 %v3789_v45 }
 0xb0c   :  { %3459 = vmatpush3.bf16.msra.mxu1 %v4469_v47 }
 0xbc2   :  { %v2281_v4 = vpop.f32.mrb[18].mxu1 }
 0xbc3   :  { %v2282_v20 = vadd.f32 %v4534_v55, %v2281_v4  ;;  %v2717_v32 = vpop.f32.mrb[19].mxu1 }
 0xbc5   :  { %2287 = vperm.xlu1 %3539, %v2282_v20  }
 0xbc9   :  { %2394 = vperm.xlu1 %3539, %v73_v44  }
 0xbcd   :  { %2499 = vrot.lane.b32.xlu1 %v2282_v20, %s3792_s22 }
 0xc44   :  { %v2288_v51 = vpop.permute.xlu1 %2287 }
 0xc45   :  { %v2290_v5 = vmul.f32 %v2288_v51, %v4485_v56  ;;  %v2291_v24 = vmul.f32 %v2288_v51, %v4488_v60  ;;  %v2293_v19 = vmul.f32 %v2288_v51, %v4497_v39  ;;  %v2292_v41 = vmul.f32 %v2288_v51, %v4508_v9 }
 0xc47   :  { %v2294_v45 = vadd.f32 %v2290_v5, %v4494_v26  ;;  %v2295_v37 = vadd.f32 %v2291_v24, %v4499_v49  ;;  %v2297_v29 = vadd.f32 %v2293_v19, %v4505_v8 }
 0xc48   :  { %v2395_v47 = vpop.permute.xlu1 %2394 }
 0xc49   :  { %v2574_v3 = vmul.f32 -1.442695, %v2294_v45  ;;  %v2575_v42 = vmul.f32 -1.442695, %v2295_v37  ;;  %v2397_v38 = vmul.f32 %v2395_v47, %v4485_v56  ;;  %v2398_v22 = vmul.f32 %v2395_v47, %v4488_v60 }
 0xc4a   :  { %v2400_v46 = vmul.f32 %v2395_v47, %v4497_v39  ;;  %v2576_v48 = vmul.f32 -1.442695, %v2297_v29  ;;  %v2296_v56 = vadd.f32 %v2292_v41, %v4513_v59  ;;  %v2399_v52 = vmul.f32 %v2395_v47, %v4508_v9 }
 0xc4b   :  { %3701 = vpow2.f32 %v2574_v3  ;;  %v2401_v23 = vadd.f32 %v2397_v38, %v4494_v26  ;;  %v2402_v28 = vadd.f32 %v2398_v22, %v4499_v49 }
 0xc4c   :  { %3703 = vpow2.f32 %v2575_v42  ;;  %v2404_v60 = vadd.f32 %v2400_v46, %v4505_v8  ;;  %v2403_v40 = vadd.f32 %v2399_v52, %v4513_v59  ;;  %v2500_v32 = vpop.permute.xlu1 %2499 }
 0xc4d   :  { %v2577_v27 = vmul.f32 -1.442695, %v2401_v23  ;;  %v2578_v33 = vmul.f32 -1.442695, %v2402_v28  ;;  %v2511_v51 = vsel %vm2510_vm3, %v4537_v57, %v2500_v32 }
 0xc4e   :  { %v2579_v34 = vmul.f32 -1.442695, %v2404_v60 }
 0xc4f   :  { %3705 = vpow2.f32 %v2577_v27 }
 0xc50   :  { %3707 = vpow2.f32 %v2578_v33 }
 0xc51   :  { %3709 = vpow2.f32 %v2576_v48 }
 0xc52   :  { %3711 = vtanh.f32 %v2296_v56 }
 0xc55   :  { %v3702_v26 = vpop.eup %3701 }
 0xc56   :  { %v3704_v25 = vpop.eup %3703  ;;  %v2301_v49 = vadd.f32 1.0, %v3702_v26 }
 0xc57   :  { %v2307_v30 = vadd.f32 1.0, %v3704_v25 }
 0xc58   :  { %3713 = vrcp.f32 %v2301_v49 }
 0xc59   :  { %3715 = vrcp.f32 %v2307_v30  ;;  %v3706_v39 = vpop.eup %3705 }
 0xc5a   :  { %v3708_v43 = vpop.eup %3707  ;;  %v2408_v50 = vadd.f32 1.0, %v3706_v39  ;;  %3717 = vpow2.f32 %v2579_v34 }
 0xc5b   :  { %v2414_v53 = vadd.f32 1.0, %v3708_v43  ;;  %3719 = vtanh.f32 %v2403_v40  ;;  %v3710_v8 = vpop.eup %3709 }
 0xc5c   :  { %3721 = vrcp.f32 %v2408_v50  ;;  %v3712_v9 = vpop.eup %3711  ;;  %v2314_v7 = vadd.f32 1.0, %v3710_v8 }
 0xc5d   :  { %3723 = vrcp.f32 %v2414_v53 }
 0xc5e   :  { %3725 = vrcp.f32 %v2314_v7 }
 0xc62   :  { %v3714_v63 = vpop.eup %3713 }
 0xc63   :  { %v3716_v2 = vpop.eup %3715  ;;  %v2318_v11 = vmul.f32 %v3714_v63, %v3712_v9 }
 0xc64   :  { %v2317_v14 = vmul.f32 %v3716_v2, %v4373_v36  ;;  %v3718_v17 = vpop.eup %3717 }
 0xc65   :  { %v3720_v21 = vpop.eup %3719  ;;  %v2421_v54 = vadd.f32 1.0, %v3718_v17 }
 0xc66   :  { %v2319_v59 = vadd.f32 %v2318_v11, %v2317_v14  ;;  %v3722_v31 = vpop.eup %3721 }
 0xc67   :  { %v3724_v35 = vpop.eup %3723  ;;  %v2425_v10 = vmul.f32 %v3722_v31, %v3720_v21 }
 0xc68   :  { %3727 = vtanh.f32 %v2319_v59  ;;  %v2424_v12 = vmul.f32 %v3724_v35, %v4373_v36  ;;  %v3726_v0 = vpop.eup %3725 }
 0xc69   :  { %3729 = vrcp.f32 %v2421_v54 }
 0xc6a   :  { %v2426_v58 = vadd.f32 %v2425_v10, %v2424_v12 }
 0xc6c   :  { %3731 = vtanh.f32 %v2426_v58 }
 0xc72   :  { %v3728_v6 = vpop.eup %3727 }
 0xc73   :  { %v2321_v13 = vmul.f32 %v3728_v6, %v3726_v0  ;;  %v3730_v15 = vpop.eup %3729 }
 0xc75   :  { %2751 = vmatmul.mubr.f32.vlgmr.msra.gmra.mrb[20].mxu0 %v2321_v13 }
 0xc76   :  { %v3732_v18 = vpop.eup %3731 }
 0xc77   :  { %v2428_v16 = vmul.f32 %v3732_v18, %v3730_v15 }
 0xc79   :  { %2786 = vmatmul.mubr.f32.vlgmr.msra.gmra.mrb[20].mxu1 %v2428_v16 }
 0xd48   :  { %v2388_v61 = vpop.f32.mrb[20].mxu0 }
 0xd49   :  { %v2389_v62 = vadd.f32 %v4534_v55, %v2388_v61  ;;  %v2752_v1 = vpop.f32.mrb[21].mxu0 }
 0xd4b   :  { %2503 = vrot.lane.b32.xlu0 %v2389_v62, %s3793_s1 }
 0xd4c   :  { %v2495_v4 = vpop.f32.mrb[20].mxu1 }
 0xd4d   :  { %v2496_v36 = vadd.f32 %v4534_v55, %v2495_v4  ;;  %v2787_v20 = vpop.f32.mrb[21].mxu1 }
 0xd4f   :  { %2507 = vrot.lane.b32.xlu1 %v2496_v36, %s3794_s23 }
 0xdbd   :  { %v2504_v44 = vpop.permute.xlu0 %2503 }
 0xdbe   :  { %v2512_v5 = vsel %vm262_vm1, %v2511_v51, %v2504_v44 }
 0xdc1   :  { %v2508_v24 = vpop.permute.xlu1 %2507 }
 0xdc2   :  { %v2514_v45 = vsel %vm2513_vm4, %v2512_v5, %v2508_v24 }
 0xdc3   :  { %2516 = vst.msk [vmem:[%s4605_s10] sm:$0xff] %vm2515_vm5, %v2514_v45 }
 0xdc4   :  { %2521 = vsyncpa [#allocation4], 1 }
 0xdc5   :  { %2522 = vsyncpa [#allocation6], 1 }

</bundles_post_ra>
